<compile_context>
chip_gen: v7x
topology: tpu7x:2x2x1
jax: 0.10.0
libtpu: 0.0.40
codegen_flags: <defaults>
</compile_context>

<pallas_src>
import functools

import jax
import jax.numpy as jnp
from jax.experimental import pallas as pl
from jax.experimental.pallas import tpu as pltpu


def _bcmf_cross_attn_kernel(amr_ref, pad_ref, vis_ref,
                            wa_ref, wv_ref, wao_ref, bao_ref, wvo_ref, bvo_ref,
                            amr_out_ref, vis_out_ref,
                            *, nheads, head_dim, inv_t):
    f32 = jnp.float32
    t = pl.program_id(1)

    amr = amr_ref[0]        # (S, D)   AMR/text memory features (shared over t)
    pad = pad_ref[0]        # (1, S)   1.0 where AMR token is padding
    vis = vis_ref[0, 0]     # (L, D)   visual features for this (b, t)

    S, D = amr.shape
    L = vis.shape[0]
    scale = float(head_dim) ** -0.5
    neg_inf = jnp.finfo(f32).min

    # Fused (qk | v) projections, batched over heads. Weights arrive as
    # (nheads, D, 2*head_dim), already transposed and head-split by the wrapper.
    amr_h = jnp.broadcast_to(amr[None], (nheads, S, D))
    vis_h = jnp.broadcast_to(vis[None], (nheads, L, D))
    pa = jnp.einsum('hsd,hdc->hsc', amr_h, wa_ref[...],
                    preferred_element_type=f32)          # (h, S, 2*hd)
    pv = jnp.einsum('hld,hdc->hlc', vis_h, wv_ref[...],
                    preferred_element_type=f32)          # (h, L, 2*hd)
    a_qk, a_v = pa[..., :head_dim], pa[..., head_dim:]   # (h, S, hd) each
    v_qk, v_v = pv[..., :head_dim], pv[..., head_dim:]   # (h, L, hd) each

    # Direction 1: AMR attends to visual (no visual pad mask in this path).
    logits_sl = jnp.einsum('hsc,hlc->hsl', a_qk, v_qk,
                           preferred_element_type=f32) * scale   # (h, S, L)
    p_av = jax.nn.softmax(logits_sl, axis=-1)
    amr2_h = jnp.einsum('hsl,hlc->hsc', p_av, v_v,
                        preferred_element_type=f32)              # (h, S, hd)

    # Direction 2: visual attends to AMR (mask padded AMR tokens). The
    # transposed logits come from a canonical batched matmul (no XLU transpose).
    logits_ls = jnp.einsum('hlc,hsc->hls', v_qk, a_qk,
                           preferred_element_type=f32) * scale   # (h, L, S)
    logits_ls = jnp.where(pad[None, :, :] > 0.5, neg_inf, logits_ls)
    p_va = jax.nn.softmax(logits_ls, axis=-1)
    vis2_h = jnp.einsum('hls,hsc->hlc', p_va, a_v,
                        preferred_element_type=f32)              # (h, L, hd)

    # Output projections with the head-merge folded into the contraction:
    # per-head (.,hd)@(hd,D) batched matmul, then sum over heads. Bias add,
    # dropout(p=0) == identity.
    amr2 = jnp.einsum('hsc,hcd->hsd', amr2_h, wao_ref[...],
                      preferred_element_type=f32).sum(axis=0) + bao_ref[...]
    vis2 = jnp.einsum('hlc,hcd->hld', vis2_h, wvo_ref[...],
                      preferred_element_type=f32).sum(axis=0) + bvo_ref[...]

    # 'dot' fusions.
    vis_out_ref[0, 0] = vis * vis2                               # (L, D)

    # Fused mean over T: AMR output block is resident across the t axis.
    @pl.when(t == 0)
    def _():
        amr_out_ref[...] = jnp.zeros_like(amr_out_ref)
    amr_out_ref[0] += (amr2 * amr) * inv_t


def bcmf_forward_image_multiscale(params, multiscale_feats, multiscale_poses,
                                  amr_token_feats, amr_token_seg_ids, *, nheads):
    """BCMF.forward_image_multiscale with multiscale_is_flattened=True,
    use_text=False, amr_pos_type='none', text_pos_type='none'."""
    B, S, D = amr_token_feats.shape
    BT, L, _ = multiscale_feats.shape
    assert BT % B == 0, "flattened batch*time must be a multiple of batch"
    T = BT // B
    hd = D // nheads

    # visual features: add positional encodings once, view as (B, T, L, D)
    ms = (multiscale_feats + multiscale_poses).reshape(B, T, L, D)
    # AMR pad mask: seg_ids == 0 marks padding. No repeat over T.
    pad = (amr_token_seg_ids == 0).astype(jnp.float32).reshape(B, 1, S)
    # amr_poses / text positions are all-zero under this config; adding them
    # (amr_text_add_pos=True) is a no-op, so it is elided.

    # ---- host-side (one-time) weight preparation: transpose, fuse qk|v, split heads
    def qk_v_heads(w_qk, w_v):
        cat = jnp.concatenate([w_qk.T.reshape(D, nheads, hd),
                               w_v.T.reshape(D, nheads, hd)], axis=-1)  # (D, h, 2hd)
        return cat.transpose(1, 0, 2)                                   # (h, D, 2hd)

    wa3 = qk_v_heads(params["amr_emb_w"], params["amr_v_emb_w"])
    wv3 = qk_v_heads(params["vis_emb_w"], params["vis_v_emb_w"])
    wao3 = params["amr_out_w"].T.reshape(nheads, hd, D)
    wvo3 = params["visual_out_w"].T.reshape(nheads, hd, D)
    bao = params["amr_out_b"].reshape(1, D)
    bvo = params["visual_out_b"].reshape(1, D)

    kernel = functools.partial(_bcmf_cross_attn_kernel,
                               nheads=nheads, head_dim=hd, inv_t=1.0 / T)

    w3_spec = pl.BlockSpec((nheads, D, 2 * hd), lambda b, t: (0, 0, 0))
    wo_spec = pl.BlockSpec((nheads, hd, D), lambda b, t: (0, 0, 0))
    b_spec = pl.BlockSpec((1, D), lambda b, t: (0, 0))

    amr_out, vis_out4 = pl.pallas_call(
        kernel,
        out_shape=(jax.ShapeDtypeStruct((B, S, D), jnp.float32),
                   jax.ShapeDtypeStruct((B, T, L, D), jnp.float32)),
        grid=(B, T),
        in_specs=[
            pl.BlockSpec((1, S, D), lambda b, t: (b, 0, 0)),      # AMR feats (no repeat)
            pl.BlockSpec((1, 1, S), lambda b, t: (b, 0, 0)),      # AMR pad mask
            pl.BlockSpec((1, 1, L, D), lambda b, t: (b, t, 0, 0)),  # visual feats
            w3_spec, w3_spec,                                     # fused qk|v proj weights
            wo_spec, b_spec, wo_spec, b_spec,                     # output projections
        ],
        out_specs=(
            # constant block index across t -> resident accumulator (fused T-mean)
            pl.BlockSpec((1, S, D), lambda b, t: (b, 0, 0)),
            pl.BlockSpec((1, 1, L, D), lambda b, t: (b, t, 0, 0)),
        ),
        compiler_params=pltpu.CompilerParams(
            dimension_semantics=("parallel", "arbitrary")),
    )(amr_token_feats, pad, ms, wa3, wv3, wao3, bao, wvo3, bvo)

    ms_out = vis_out4.reshape(BT, L, D)
    text_feats = None                                             # use_text=False
    return ms_out, amr_out, text_feats


def _reference_forward(params, multiscale_feats, multiscale_poses,
                       amr_token_feats, amr_token_seg_ids, *, nheads):
    """Pure-JAX replica of the PyTorch forward for verification."""
    B, S, D = amr_token_feats.shape
    BT, L, _ = multiscale_feats.shape
    T = BT // B
    hd = D // nheads
    scale = hd ** -0.5

    ms = multiscale_feats + multiscale_poses
    memory = jnp.repeat(amr_token_feats, T, axis=0)
    pad = jnp.repeat(amr_token_seg_ids == 0, T, axis=0)            # (BT, S)

    def lin(x, w, b=None):
        y = x @ w.T
        return y if b is None else y + b

    def split_heads(x):
        bt, s, _ = x.shape
        return x.reshape(bt, s, nheads, hd).transpose(0, 2, 1, 3)

    a_qk = split_heads(lin(memory, params["amr_emb_w"]))
    v_qk = split_heads(lin(ms, params["vis_emb_w"]))
    a_v = split_heads(lin(memory, params["amr_v_emb_w"]))
    v_v = split_heads(lin(ms, params["vis_v_emb_w"]))

    logits = jnp.einsum('bhsc,bhlc->bhsl', a_qk, v_qk) * scale
    p_av = jax.nn.softmax(logits, axis=-1)
    amr2 = jnp.einsum('bhsl,bhlc->bhsc', p_av, v_v)
    amr2 = amr2.transpose(0, 2, 1, 3).reshape(BT, S, D)

    neg = jnp.finfo(jnp.float32).min
    lt = jnp.where(pad[:, None, None, :], neg, logits.transpose(0, 1, 3, 2))
    p_va = jax.nn.softmax(lt, axis=-1)
    vis2 = jnp.einsum('bhls,bhsc->bhlc', p_va, a_v)
    vis2 = vis2.transpose(0, 2, 1, 3).reshape(BT, L, D)

    amr2 = lin(amr2, params["amr_out_w"], params["amr_out_b"])
    vis2 = lin(vis2, params["visual_out_w"], params["visual_out_b"])

    memory_out = amr2 * memory
    ms_out = ms * vis2
    amr_out = memory_out.reshape(B, T, S, D).mean(axis=1)
    return ms_out, amr_out


def init_params(key, d_model):
    ks = jax.random.split(key, 8)
    s = 1.0 / float(d_model) ** 0.5
    f = jnp.float32
    return {
        "amr_emb_w":    jax.random.normal(ks[0], (d_model, d_model), f) * s,
        "amr_v_emb_w":  jax.random.normal(ks[1], (d_model, d_model), f) * s,
        "vis_emb_w":    jax.random.normal(ks[2], (d_model, d_model), f) * s,
        "vis_v_emb_w":  jax.random.normal(ks[3], (d_model, d_model), f) * s,
        "amr_out_w":    jax.random.normal(ks[4], (d_model, d_model), f) * s,
        "amr_out_b":    (jax.random.normal(ks[5], (d_model,), f) * s).reshape(1, d_model),
        "visual_out_w": jax.random.normal(ks[6], (d_model, d_model), f) * s,
        "visual_out_b": (jax.random.normal(ks[7], (d_model,), f) * s).reshape(1, d_model),
    }


if __name__ == "__main__":
    key = jax.random.PRNGKey(0)
    d_model, nheads = 32, 4
    B, T, S, Hs, Ws = 2, 2, 8, 4, 4
    L = Hs * Ws
    BT = B * T

    k1, k2, k3, kp = jax.random.split(key, 4)
    multiscale_feats = jax.random.normal(k1, (BT, L, d_model), jnp.float32)
    multiscale_poses = jax.random.normal(k2, (BT, L, d_model), jnp.float32) * 0.1
    amr_token_feats = jax.random.normal(k3, (B, S, d_model), jnp.float32)
    # seg_ids == 0 marks padding; pad the last 2 amr tokens of each batch.
    amr_token_seg_ids = jnp.ones((B, S), jnp.int32).at[:, -2:].set(0)

    params = init_params(kp, d_model)

    ms_out, amr_out, text_feats = bcmf_forward_image_multiscale(
        params, multiscale_feats, multiscale_poses,
        amr_token_feats, amr_token_seg_ids, nheads=nheads)
    jax.block_until_ready((ms_out, amr_out))

    ref_ms, ref_amr = _reference_forward(
        params, multiscale_feats, multiscale_poses,
        amr_token_feats, amr_token_seg_ids, nheads=nheads)

    assert ms_out.shape == (BT, L, d_model)
    assert amr_out.shape == (B, S, d_model)
    assert text_feats is None
    assert jnp.allclose(ms_out, ref_ms, atol=1e-4, rtol=1e-4)
    assert jnp.allclose(amr_out, ref_amr, atol=1e-4, rtol=1e-4)

    print("KERNEL_OK")
</pallas_src>

<mosaic_0001>
module attributes {stable_mosaic.version = 11 : i64} {
  func.func @_bcmf_cross_attn_kernel(%arg0: i32, %arg1: i32, %arg2: memref<1x8x32xf32, #tpu.memory_space<vmem>>, %arg3: memref<1x1x8xf32, #tpu.memory_space<vmem>>, %arg4: memref<1x1x16x32xf32, #tpu.memory_space<vmem>>, %arg5: memref<4x32x16xf32, #tpu.memory_space<vmem>>, %arg6: memref<4x32x16xf32, #tpu.memory_space<vmem>>, %arg7: memref<4x8x32xf32, #tpu.memory_space<vmem>>, %arg8: memref<1x32xf32, #tpu.memory_space<vmem>>, %arg9: memref<4x8x32xf32, #tpu.memory_space<vmem>>, %arg10: memref<1x32xf32, #tpu.memory_space<vmem>>, %arg11: memref<1x8x32xf32, #tpu.memory_space<vmem>>, %arg12: memref<1x1x16x32xf32, #tpu.memory_space<vmem>>) attributes {dimension_semantics = [#tpu.dimension_semantics<parallel>, #tpu.dimension_semantics<arbitrary>], iteration_bounds = array<i64: 2, 2>, scalar_prefetch = 0 : i64, scratch_operands = 0 : i64, tpu.core_type = #tpu.core_type<tc>, window_params = [{transform_indices = @transform_0, window_bounds = array<i64: 1, 8, 32>}, {transform_indices = @transform_1, window_bounds = array<i64: 1, 1, 8>}, {transform_indices = @transform_2, window_bounds = array<i64: 1, 1, 16, 32>}, {pipeline_mode = #tpu.pipeline_mode<synchronous>, transform_indices = @transform_3, window_bounds = array<i64: 4, 32, 16>}, {pipeline_mode = #tpu.pipeline_mode<synchronous>, transform_indices = @transform_4, window_bounds = array<i64: 4, 32, 16>}, {pipeline_mode = #tpu.pipeline_mode<synchronous>, transform_indices = @transform_5, window_bounds = array<i64: 4, 8, 32>}, {pipeline_mode = #tpu.pipeline_mode<synchronous>, transform_indices = @transform_6, window_bounds = array<i64: 1, 32>}, {pipeline_mode = #tpu.pipeline_mode<synchronous>, transform_indices = @transform_7, window_bounds = array<i64: 4, 8, 32>}, {pipeline_mode = #tpu.pipeline_mode<synchronous>, transform_indices = @transform_8, window_bounds = array<i64: 1, 32>}, {transform_indices = @transform_9, window_bounds = array<i64: 1, 8, 32>}, {transform_indices = @transform_10, window_bounds = array<i64: 1, 1, 16, 32>}]} {
    %c0 = arith.constant 0 : index
    %c0_0 = arith.constant 0 : index
    %c0_1 = arith.constant 0 : index
    %0 = vector.load %arg2[%c0, %c0_0, %c0_1] : memref<1x8x32xf32, #tpu.memory_space<vmem>>, vector<1x8x32xf32>
    %1 = vector.shape_cast %0 : vector<1x8x32xf32> to vector<8x32xf32>
    %c0_2 = arith.constant 0 : index
    %c0_3 = arith.constant 0 : index
    %c0_4 = arith.constant 0 : index
    %2 = vector.load %arg3[%c0_2, %c0_3, %c0_4] : memref<1x1x8xf32, #tpu.memory_space<vmem>>, vector<1x1x8xf32>
    %3 = vector.shape_cast %2 : vector<1x1x8xf32> to vector<1x8xf32>
    %c0_5 = arith.constant 0 : index
    %c0_6 = arith.constant 0 : index
    %c0_7 = arith.constant 0 : index
    %c0_8 = arith.constant 0 : index
    %4 = vector.load %arg4[%c0_5, %c0_6, %c0_7, %c0_8] : memref<1x1x16x32xf32, #tpu.memory_space<vmem>>, vector<1x1x16x32xf32>
    %5 = vector.shape_cast %4 : vector<1x1x16x32xf32> to vector<16x32xf32>
    %6 = vector.shape_cast %1 : vector<8x32xf32> to vector<1x8x32xf32>
    %7 = vector.shape_cast %6 : vector<1x8x32xf32> to vector<1x8x32xf32>
    %8 = vector.broadcast %7 : vector<1x8x32xf32> to vector<4x8x32xf32>
    %9 = vector.shape_cast %5 : vector<16x32xf32> to vector<1x16x32xf32>
    %10 = vector.shape_cast %9 : vector<1x16x32xf32> to vector<1x16x32xf32>
    %11 = vector.broadcast %10 : vector<1x16x32xf32> to vector<4x16x32xf32>
    %c0_9 = arith.constant 0 : index
    %c0_10 = arith.constant 0 : index
    %c0_11 = arith.constant 0 : index
    %12 = vector.load %arg5[%c0_9, %c0_10, %c0_11] : memref<4x32x16xf32, #tpu.memory_space<vmem>>, vector<4x32x16xf32>
    "tpu.trace_start"() <{level = 10 : i32, message = "hsd,hdc->hsc"}> : () -> ()
    %cst = arith.constant dense<0.000000e+00> : vector<4x8x16xf32>
    %13 = tpu.matmul %8, %12, %cst {dimension_numbers = #tpu.dot_dimension_numbers<[2], [1], [1], [2], [0, 0, 0, 1, 1, 2], [0], [0]>} : vector<4x8x32xf32>, vector<4x32x16xf32>, vector<4x8x16xf32> -> vector<4x8x16xf32>
    "tpu.trace_stop"() : () -> ()
    %c0_12 = arith.constant 0 : index
    %c0_13 = arith.constant 0 : index
    %c0_14 = arith.constant 0 : index
    %14 = vector.load %arg6[%c0_12, %c0_13, %c0_14] : memref<4x32x16xf32, #tpu.memory_space<vmem>>, vector<4x32x16xf32>
    "tpu.trace_start"() <{level = 10 : i32, message = "hld,hdc->hlc"}> : () -> ()
    %cst_15 = arith.constant dense<0.000000e+00> : vector<4x16x16xf32>
    %15 = tpu.matmul %11, %14, %cst_15 {dimension_numbers = #tpu.dot_dimension_numbers<[2], [1], [1], [2], [0, 0, 0, 1, 1, 2], [0], [0]>} : vector<4x16x32xf32>, vector<4x32x16xf32>, vector<4x16x16xf32> -> vector<4x16x16xf32>
    "tpu.trace_stop"() : () -> ()
    %16 = vector.extract_strided_slice %13 {offsets = [0, 0, 0], sizes = [4, 8, 8], strides = [1, 1, 1]} : vector<4x8x16xf32> to vector<4x8x8xf32>
    %17 = vector.extract_strided_slice %13 {offsets = [0, 0, 8], sizes = [4, 8, 8], strides = [1, 1, 1]} : vector<4x8x16xf32> to vector<4x8x8xf32>
    %18 = vector.extract_strided_slice %15 {offsets = [0, 0, 0], sizes = [4, 16, 8], strides = [1, 1, 1]} : vector<4x16x16xf32> to vector<4x16x8xf32>
    %19 = vector.extract_strided_slice %15 {offsets = [0, 0, 8], sizes = [4, 16, 8], strides = [1, 1, 1]} : vector<4x16x16xf32> to vector<4x16x8xf32>
    "tpu.trace_start"() <{level = 10 : i32, message = "hsc,hlc->hsl"}> : () -> ()
    %cst_16 = arith.constant dense<0.000000e+00> : vector<4x8x16xf32>
    %20 = tpu.matmul %16, %18, %cst_16 {dimension_numbers = #tpu.dot_dimension_numbers<[2], [2], [1], [1], [0, 0, 0, 1, 1, 1], [0], [0]>} : vector<4x8x8xf32>, vector<4x16x8xf32>, vector<4x8x16xf32> -> vector<4x8x16xf32>
    "tpu.trace_stop"() : () -> ()
    %cst_17 = arith.constant 0.353553385 : f32
    %21 = vector.broadcast %cst_17 : f32 to vector<4x8x16xf32>
    %22 = arith.mulf %20, %21 : vector<4x8x16xf32>
    %cst_18 = arith.constant dense<0xFF800000> : vector<4x8xf32>
    %23 = vector.multi_reduction <maximumf>, %22, %cst_18 [2] : vector<4x8x16xf32> to vector<4x8xf32>
    %cst_19 = arith.constant 0xFF800000 : f32
    %24 = vector.broadcast %cst_19 : f32 to vector<4x8xf32>
    %25 = arith.maximumf %24, %23 : vector<4x8xf32>
    %26 = vector.shape_cast %25 : vector<4x8xf32> to vector<4x8x1xf32>
    %27 = vector.broadcast %26 : vector<4x8x1xf32> to vector<4x8x16xf32>
    %28 = arith.subf %22, %27 : vector<4x8x16xf32>
    %29 = math.exp %28 : vector<4x8x16xf32>
    %cst_20 = arith.constant dense<0.000000e+00> : vector<4x8xf32>
    %30 = vector.multi_reduction <add>, %29, %cst_20 [2] : vector<4x8x16xf32> to vector<4x8xf32>
    %31 = vector.shape_cast %30 : vector<4x8xf32> to vector<4x8x1xf32>
    %32 = vector.broadcast %31 : vector<4x8x1xf32> to vector<4x8x16xf32>
    %33 = arith.divf %29, %32 : vector<4x8x16xf32>
    "tpu.trace_start"() <{level = 10 : i32, message = "hsl,hlc->hsc"}> : () -> ()
    %cst_21 = arith.constant dense<0.000000e+00> : vector<4x8x8xf32>
    %34 = tpu.matmul %33, %19, %cst_21 {dimension_numbers = #tpu.dot_dimension_numbers<[2], [1], [1], [2], [0, 0, 0, 1, 1, 2], [0], [0]>} : vector<4x8x16xf32>, vector<4x16x8xf32>, vector<4x8x8xf32> -> vector<4x8x8xf32>
    "tpu.trace_stop"() : () -> ()
    "tpu.trace_start"() <{level = 10 : i32, message = "hlc,hsc->hls"}> : () -> ()
    %cst_22 = arith.constant dense<0.000000e+00> : vector<4x16x8xf32>
    %35 = tpu.matmul %18, %16, %cst_22 {dimension_numbers = #tpu.dot_dimension_numbers<[2], [2], [1], [1], [0, 0, 0, 1, 1, 1], [0], [0]>} : vector<4x16x8xf32>, vector<4x8x8xf32>, vector<4x16x8xf32> -> vector<4x16x8xf32>
    "tpu.trace_stop"() : () -> ()
    %cst_23 = arith.constant 0.353553385 : f32
    %36 = vector.broadcast %cst_23 : f32 to vector<4x16x8xf32>
    %37 = arith.mulf %35, %36 : vector<4x16x8xf32>
    %38 = vector.shape_cast %3 : vector<1x8xf32> to vector<1x1x8xf32>
    %cst_24 = arith.constant 5.000000e-01 : f32
    %39 = vector.broadcast %cst_24 : f32 to vector<1x1x8xf32>
    %40 = arith.cmpf ogt, %38, %39 : vector<1x1x8xf32>
    %cst_25 = arith.constant -3.40282347E+38 : f32
    %41 = vector.shape_cast %40 : vector<1x1x8xi1> to vector<1x1x8xi1>
    %42 = vector.broadcast %41 : vector<1x1x8xi1> to vector<4x16x8xi1>
    %43 = vector.broadcast %cst_25 : f32 to vector<4x16x8xf32>
    %44 = arith.select %42, %43, %37 : vector<4x16x8xi1>, vector<4x16x8xf32>
    %cst_26 = arith.constant dense<0xFF800000> : vector<4x16xf32>
    %45 = vector.multi_reduction <maximumf>, %44, %cst_26 [2] : vector<4x16x8xf32> to vector<4x16xf32>
    %cst_27 = arith.constant 0xFF800000 : f32
    %46 = vector.broadcast %cst_27 : f32 to vector<4x16xf32>
    %47 = arith.maximumf %46, %45 : vector<4x16xf32>
    %48 = vector.shape_cast %47 : vector<4x16xf32> to vector<4x16x1xf32>
    %49 = vector.broadcast %48 : vector<4x16x1xf32> to vector<4x16x8xf32>
    %50 = arith.subf %44, %49 : vector<4x16x8xf32>
    %51 = math.exp %50 : vector<4x16x8xf32>
    %cst_28 = arith.constant dense<0.000000e+00> : vector<4x16xf32>
    %52 = vector.multi_reduction <add>, %51, %cst_28 [2] : vector<4x16x8xf32> to vector<4x16xf32>
    %53 = vector.shape_cast %52 : vector<4x16xf32> to vector<4x16x1xf32>
    %54 = vector.broadcast %53 : vector<4x16x1xf32> to vector<4x16x8xf32>
    %55 = arith.divf %51, %54 : vector<4x16x8xf32>
    "tpu.trace_start"() <{level = 10 : i32, message = "hls,hsc->hlc"}> : () -> ()
    %cst_29 = arith.constant dense<0.000000e+00> : vector<4x16x8xf32>
    %56 = tpu.matmul %55, %17, %cst_29 {dimension_numbers = #tpu.dot_dimension_numbers<[2], [1], [1], [2], [0, 0, 0, 1, 1, 2], [0], [0]>} : vector<4x16x8xf32>, vector<4x8x8xf32>, vector<4x16x8xf32> -> vector<4x16x8xf32>
    "tpu.trace_stop"() : () -> ()
    %c0_30 = arith.constant 0 : index
    %c0_31 = arith.constant 0 : index
    %c0_32 = arith.constant 0 : index
    %57 = vector.load %arg7[%c0_30, %c0_31, %c0_32] : memref<4x8x32xf32, #tpu.memory_space<vmem>>, vector<4x8x32xf32>
    "tpu.trace_start"() <{level = 10 : i32, message = "hsc,hcd->hsd"}> : () -> ()
    %cst_33 = arith.constant dense<0.000000e+00> : vector<4x8x32xf32>
    %58 = tpu.matmul %34, %57, %cst_33 {dimension_numbers = #tpu.dot_dimension_numbers<[2], [1], [1], [2], [0, 0, 0, 1, 1, 2], [0], [0]>} : vector<4x8x8xf32>, vector<4x8x32xf32>, vector<4x8x32xf32> -> vector<4x8x32xf32>
    "tpu.trace_stop"() : () -> ()
    %cst_34 = arith.constant dense<0.000000e+00> : vector<8x32xf32>
    %59 = vector.multi_reduction <add>, %58, %cst_34 [0] : vector<4x8x32xf32> to vector<8x32xf32>
    %c0_35 = arith.constant 0 : index
    %c0_36 = arith.constant 0 : index
    %60 = vector.load %arg8[%c0_35, %c0_36] : memref<1x32xf32, #tpu.memory_space<vmem>>, vector<1x32xf32>
    %61 = vector.broadcast %60 : vector<1x32xf32> to vector<8x32xf32>
    %62 = arith.addf %59, %61 : vector<8x32xf32>
    %c0_37 = arith.constant 0 : index
    %c0_38 = arith.constant 0 : index
    %c0_39 = arith.constant 0 : index
    %63 = vector.load %arg9[%c0_37, %c0_38, %c0_39] : memref<4x8x32xf32, #tpu.memory_space<vmem>>, vector<4x8x32xf32>
    "tpu.trace_start"() <{level = 10 : i32, message = "hlc,hcd->hld"}> : () -> ()
    %cst_40 = arith.constant dense<0.000000e+00> : vector<4x16x32xf32>
    %64 = tpu.matmul %56, %63, %cst_40 {dimension_numbers = #tpu.dot_dimension_numbers<[2], [1], [1], [2], [0, 0, 0, 1, 1, 2], [0], [0]>} : vector<4x16x8xf32>, vector<4x8x32xf32>, vector<4x16x32xf32> -> vector<4x16x32xf32>
    "tpu.trace_stop"() : () -> ()
    %cst_41 = arith.constant dense<0.000000e+00> : vector<16x32xf32>
    %65 = vector.multi_reduction <add>, %64, %cst_41 [0] : vector<4x16x32xf32> to vector<16x32xf32>
    %c0_42 = arith.constant 0 : index
    %c0_43 = arith.constant 0 : index
    %66 = vector.load %arg10[%c0_42, %c0_43] : memref<1x32xf32, #tpu.memory_space<vmem>>, vector<1x32xf32>
    %67 = vector.broadcast %66 : vector<1x32xf32> to vector<16x32xf32>
    %68 = arith.addf %65, %67 : vector<16x32xf32>
    %69 = arith.mulf %5, %68 : vector<16x32xf32>
    %c0_44 = arith.constant 0 : index
    %c0_45 = arith.constant 0 : index
    %c0_46 = arith.constant 0 : index
    %c0_47 = arith.constant 0 : index
    %70 = vector.load %arg12[%c0_44, %c0_45, %c0_46, %c0_47] : memref<1x1x16x32xf32, #tpu.memory_space<vmem>>, vector<1x1x16x32xf32>
    %71 = vector.shape_cast %70 : vector<1x1x16x32xf32> to vector<16x32xf32>
    %72 = vector.shape_cast %69 : vector<16x32xf32> to vector<1x1x16x32xf32>
    tpu.vector_store %arg12[%c0_44, %c0_45, %c0_46, %c0_47], %72 {strides = array<i32>} : memref<1x1x16x32xf32, #tpu.memory_space<vmem>>, vector<1x1x16x32xf32>,
    %c0_i32 = arith.constant 0 : i32
    %73 = arith.cmpi eq, %arg1, %c0_i32 : i32
    %74 = arith.extui %73 : i1 to i32
    %c0_i32_48 = arith.constant 0 : i32
    %75 = arith.cmpi ne, %74, %c0_i32_48 : i32
    scf.if %75 {
      %cst_56 = arith.constant 0.000000e+00 : f32
      %85 = vector.broadcast %cst_56 : f32 to vector<1x8x32xf32>
      %c0_57 = arith.constant 0 : index
      %c0_58 = arith.constant 0 : index
      %c0_59 = arith.constant 0 : index
      %86 = vector.load %arg11[%c0_57, %c0_58, %c0_59] : memref<1x8x32xf32, #tpu.memory_space<vmem>>, vector<1x8x32xf32>
      tpu.vector_store %arg11[%c0_57, %c0_58, %c0_59], %85 {strides = array<i32>} : memref<1x8x32xf32, #tpu.memory_space<vmem>>, vector<1x8x32xf32>,
    } else {
    }
    %c0_49 = arith.constant 0 : index
    %c0_50 = arith.constant 0 : index
    %c0_51 = arith.constant 0 : index
    %76 = vector.load %arg11[%c0_49, %c0_50, %c0_51] : memref<1x8x32xf32, #tpu.memory_space<vmem>>, vector<1x8x32xf32>
    %77 = vector.shape_cast %76 : vector<1x8x32xf32> to vector<8x32xf32>
    %78 = arith.mulf %62, %1 : vector<8x32xf32>
    %cst_52 = arith.constant 5.000000e-01 : f32
    %79 = vector.broadcast %cst_52 : f32 to vector<8x32xf32>
    %80 = arith.mulf %78, %79 : vector<8x32xf32>
    %81 = arith.addf %77, %80 : vector<8x32xf32>
    %c0_53 = arith.constant 0 : index
    %c0_54 = arith.constant 0 : index
    %c0_55 = arith.constant 0 : index
    %82 = vector.load %arg11[%c0_53, %c0_54, %c0_55] : memref<1x8x32xf32, #tpu.memory_space<vmem>>, vector<1x8x32xf32>
    %83 = vector.shape_cast %82 : vector<1x8x32xf32> to vector<8x32xf32>
    %84 = vector.shape_cast %81 : vector<8x32xf32> to vector<1x8x32xf32>
    tpu.vector_store %arg11[%c0_53, %c0_54, %c0_55], %84 {strides = array<i32>} : memref<1x8x32xf32, #tpu.memory_space<vmem>>, vector<1x8x32xf32>,
    return
  }
  func.func @transform_0(%arg0: i32, %arg1: i32) -> (i32, i32, i32) {
    %c0_i32 = arith.constant 0 : i32
    %c0_i32_0 = arith.constant 0 : i32
    %c0_i32_1 = arith.constant 0 : i32
    return %arg0, %c0_i32, %c0_i32_0 : i32, i32, i32
  }
  func.func @transform_1(%arg0: i32, %arg1: i32) -> (i32, i32, i32) {
    %c0_i32 = arith.constant 0 : i32
    %c0_i32_0 = arith.constant 0 : i32
    %c0_i32_1 = arith.constant 0 : i32
    return %arg0, %c0_i32, %c0_i32_0 : i32, i32, i32
  }
  func.func @transform_2(%arg0: i32, %arg1: i32) -> (i32, i32, i32, i32) {
    %c0_i32 = arith.constant 0 : i32
    %c0_i32_0 = arith.constant 0 : i32
    %c0_i32_1 = arith.constant 0 : i32
    return %arg0, %arg1, %c0_i32, %c0_i32_0 : i32, i32, i32, i32
  }
  func.func @transform_3(%arg0: i32, %arg1: i32) -> (i32, i32, i32) {
    %c0_i32 = arith.constant 0 : i32
    %c0_i32_0 = arith.constant 0 : i32
    %c0_i32_1 = arith.constant 0 : i32
    %c0_i32_2 = arith.constant 0 : i32
    return %c0_i32, %c0_i32_0, %c0_i32_1 : i32, i32, i32
  }
  func.func @transform_4(%arg0: i32, %arg1: i32) -> (i32, i32, i32) {
    %c0_i32 = arith.constant 0 : i32
    %c0_i32_0 = arith.constant 0 : i32
    %c0_i32_1 = arith.constant 0 : i32
    %c0_i32_2 = arith.constant 0 : i32
    return %c0_i32, %c0_i32_0, %c0_i32_1 : i32, i32, i32
  }
  func.func @transform_5(%arg0: i32, %arg1: i32) -> (i32, i32, i32) {
    %c0_i32 = arith.constant 0 : i32
    %c0_i32_0 = arith.constant 0 : i32
    %c0_i32_1 = arith.constant 0 : i32
    %c0_i32_2 = arith.constant 0 : i32
    return %c0_i32, %c0_i32_0, %c0_i32_1 : i32, i32, i32
  }
  func.func @transform_6(%arg0: i32, %arg1: i32) -> (i32, i32) {
    %c0_i32 = arith.constant 0 : i32
    %c0_i32_0 = arith.constant 0 : i32
    %c0_i32_1 = arith.constant 0 : i32
    return %c0_i32, %c0_i32_0 : i32, i32
  }
  func.func @transform_7(%arg0: i32, %arg1: i32) -> (i32, i32, i32) {
    %c0_i32 = arith.constant 0 : i32
    %c0_i32_0 = arith.constant 0 : i32
    %c0_i32_1 = arith.constant 0 : i32
    %c0_i32_2 = arith.constant 0 : i32
    return %c0_i32, %c0_i32_0, %c0_i32_1 : i32, i32, i32
  }
  func.func @transform_8(%arg0: i32, %arg1: i32) -> (i32, i32) {
    %c0_i32 = arith.constant 0 : i32
    %c0_i32_0 = arith.constant 0 : i32
    %c0_i32_1 = arith.constant 0 : i32
    return %c0_i32, %c0_i32_0 : i32, i32
  }
  func.func @transform_9(%arg0: i32, %arg1: i32) -> (i32, i32, i32) {
    %c0_i32 = arith.constant 0 : i32
    %c0_i32_0 = arith.constant 0 : i32
    %c0_i32_1 = arith.constant 0 : i32
    return %arg0, %c0_i32, %c0_i32_0 : i32, i32, i32
  }
  func.func @transform_10(%arg0: i32, %arg1: i32) -> (i32, i32, i32, i32) {
    %c0_i32 = arith.constant 0 : i32
    %c0_i32_0 = arith.constant 0 : i32
    %c0_i32_1 = arith.constant 0 : i32
    return %arg0, %arg1, %c0_i32, %c0_i32_0 : i32, i32, i32, i32
  }
}

</mosaic_0001>

<bundles_post_ra>
// kernel: tpu_custom_call.1
= control target key start
LH: loop header
LB: loop body
LE: loop exit
PB: predicated region body
PF: predicated region fallthrough
CT: control target
= control target key end

     0   :  { %s4904_s0 = inlined_call_operand.vmem [shape: f32[2,8,32], index: 0, kind: input, shape index: {}]   ;;  %s4905_s1 = inlined_call_operand.vmem [shape: f32[2,1,8], index: 1, kind: input, shape index: {}]   ;;  %s4906_s2 = inlined_call_operand.vmem [shape: f32[2,2,16,32], index: 2, kind: input, shape index: {}]   ;;  %s4907_s3 = inlined_call_operand.vmem [shape: f32[4,32,16], index: 3, kind: input, shape index: {}]   ;;  %s4908_s4 = inlined_call_operand.vmem [shape: f32[4,32,16], index: 4, kind: input, shape index: {}]   ;;  %s4909_s5 = inlined_call_operand.vmem [shape: f32[4,8,32], index: 5, kind: input, shape index: {}]   ;;  %s4910_s6 = inlined_call_operand.vmem [shape: f32[1,32], index: 6, kind: input, shape index: {}]   ;;  %s4911_s7 = inlined_call_operand.vmem [shape: f32[4,8,32], index: 7, kind: input, shape index: {}]   ;;  %s4912_s8 = inlined_call_operand.vmem [shape: f32[1,32], index: 8, kind: input, shape index: {}]   ;;  %s4913_s9 = inlined_call_operand.hbm [shape: f32[2,8,32], index: 9, kind: output, shape index: {0}]   ;;  %s4914_s10 = inlined_call_operand.hbm [shape: f32[2,2,16,32], index: 10, kind: output, shape index: {1}]  }
   0x1   :  { %4929 = sst [smem:[#allocation19_spill]] %s4904_s0 }
   0x2   :  { %4930 = sst [smem:[#allocation20_spill]] %s4905_s1 }
   0x3   :  { %4931 = sst [smem:[#allocation21_spill]] %s4906_s2 }
   0x4   :  { %4932 = sst [smem:[#allocation22_spill]] %s4907_s3 }
   0x5   :  { %4933 = sst [smem:[#allocation23_spill]] %s4913_s9 }
   0x6   :  { %4934 = sst [smem:[#allocation24_spill]] %s4914_s10 }
   0x7   :  { %16 = vsyncpa [#allocation3], 0 }
   0x8   :  { %18 = vsyncpa [#allocation3 + $0x1], 0 }
   0x9   :  { %19 = vsyncpa [#allocation5], 0 }
   0xa   :  { %21 = vsyncpa [#allocation5 + $0x1], 0  ;;  %s4226_s13 = smov 0   ;;  %s4228_s14 = smov 0  }
   0xb   :  { %s4230_s15 = smov 0   ;;  %s4232_s16 = smov 0  }
   0xc   :  { %s4234_s17 = smov 0   ;;  %s4236_s18 = smov 0  }
   0xd   :  { %s4238_s19 = smov 0   ;;  %s4240_s20 = smov 0  }
   0xe   :  { %s4242_s21 = smov 0   ;;  %s4244_s22 = smov 0  }
   0xf   :  { %s4246_s23 = smov 0  }
  0x10 LB: > { %4935 = sst [smem:[#allocation8_spill]] %s4127_s15  ;;  %s3331_s24 = sadd.s32 4294967295, %s4159_s23   ;;  %s4159_s23 = sphi %s4246_s23, %s27_s23   ;;  %s4155_s22 = sphi %s4244_s22, %s4973_s22   ;;  %s4151_s21 = sphi %s4242_s21, %s4972_s21   ;;  %s4147_s20 = sphi %s4240_s20, %s4971_s20   ;;  %s4143_s19 = sphi %s4238_s19, %s4970_s19   ;;  %s4139_s18 = sphi %s4236_s18, %s4969_s18   ;;  %s4135_s17 = sphi %s4234_s17, %s4977_s17   ;;  %s4131_s16 = sphi %s4232_s16, %s4976_s16   ;;  %s4127_s15 = sphi %s4230_s15, %s4967_s15   ;;  %s4123_s14 = sphi %s4228_s14, %s4975_s14   ;;  %s4119_s13 = sphi %s4226_s13, %s4974_s13  }
  0x11   : > { %4936 = sst [smem:[#allocation9_spill]] %s4131_s16  ;;  %s3332_s25 = sadd.s32 4294967294, %s4159_s23  }
  0x12   : > { %4937 = sst [smem:[#allocation10_spill]] %s4139_s18  ;;  %s36_s26 = sadd.s32 1, %s4151_s21 }
  0x13   : > { %4938 = sst [smem:[#allocation11_spill]] %s4151_s21  ;;  %s39_s27 = sadd.s32 1, %s4155_s22 }
  0x14   : > { %4939 = sst [smem:[#allocation12_spill]] %s4155_s22  ;;  %p37_p0 = scmp.ge.s32.totalorder %s36_s26, 2 }
  0x15   : > { %s252_s28 = sadd.s32 1, %s4139_s18  ;;  %p262_p1 = scmp.ne.s32.totalorder %s4139_s18, %s4135_s17 }
  0x16   : > { %p4288_p2 = scmp.eq.s32.totalorder %s3331_s24, 3  ;;  %s4979_s26 = smov (%p37_p0, %s36_s26), 0 }
  0x17   : > { %4941 = sst [smem:[#allocation13_spill]] %s4979_s26  ;;  %s4981_s27 = smov (!%p37_p0, %s39_s27), %s4155_s22 }
  0x18   : > { %p4297_p3 = por %p4288_p2, %p262_p1  ;;  %p268_p4 = scmp.ne.s32.totalorder %s4135_s17, %s4131_s16 }
  0x19   : > { %p41_p5 = scmp.ge.s32.totalorder %s4981_s27, 2  ;;  %p4303_p6 = scmp.eq.s32.totalorder %s3332_s25, 3 }
  0x1a   : > { %s4942_s30 = scalar_select %p4297_p3, 1, 0 }
  0x1b   : > { %s276_s12 = ssub.s32 %s4151_s21, %s4979_s26  ;;  %s280_s24 = sadd.s32 1, %s4127_s15 }
  0x1c   : > { %4943 = sst [smem:[#allocation14_spill]] %s4942_s30  ;;  %s4983_s27 = smov (%p41_p5, %s4981_s27), 0 }
  0x1d   : > { %4945 = sst [smem:[#allocation15_spill]] %s4983_s27  ;;  %p4314_p7 = por %p4303_p6, %p268_p4 }
  0x1e   : > { %p290_p8 = scmp.ne.s32.totalorder %s4127_s15, %s4123_s14  ;;  %s249_s16 = ssub.s32 %s4155_s22, %s4983_s27 }
  0x1f   : > { %p296_p9 = scmp.ne.s32.totalorder %s4123_s14, %s4119_s13  ;;  %p250_p10 = scmp.eq.s32.totalorder %s249_s16, 0 }
  0x20   : > { %s277_s25 = sor.u32 %s276_s12, %s249_s16  ;;  %p4326_p12 = por %p290_p8, %p4288_p2 }
  0x21   : > { %p278_p11 = scmp.eq.s32.totalorder %s277_s25, 0  ;;  %p4338_p13 = por %p296_p9, %p4303_p6 }
  0x22   : > { %s4331_s26 = scalar_select %p250_p10, %s4139_s18, %s252_s28  }
  0x23   : > { %s4334_s21 = scalar_select %p278_p11, %s4127_s15, %s280_s24  }
  0x24   : > { %4948 = sst [smem:[#allocation16_spill]] %s4331_s26  ;;  %p3335_p0 = scmp.ge.s32.totalorder %s4159_s23, 1 }
  0x25   : > { %4949 = sst [smem:[#allocation17_spill]] %s4334_s21  ;;  %p358_p1 = scmp.lt.s32.totalorder %s4159_s23, 5 }
  0x26   : > { %s4950_s9 = scalar_select %p4338_p13, 1, 0 }
  0x27   : > { %p359_p4 = pnand %p3335_p0, %p358_p1 }
  0x28   : > { %4951 = sst [smem:[#allocation18_spill]] %s4950_s9  ;;  %s4923_s16 = sand.u32 (!%p359_p4), 1, %s4135_s17   ;;  %v4161_v3 = vmov (!%p359_p4), 0.0|0.0   ;;  %vm4162_vm0 = vmmov (!%p359_p4), 0   ;;  %v4163_v11 = vmov (!%p359_p4), 0.0   ;;  %vm448_vm1 = vcmask (!%p359_p4), 261120  }
  0x29   : > { %362 = sbr.rel (%p359_p4) target bundleno = 1927 (0x787), region = 56  ;;  %s4952_s3 = sld [smem:[#allocation22_spill]] (!%p359_p4)  ;;  %3749 = vmatprep.subr.bf16.mxu0 (!%p359_p4), %v4161_v3  ;;  %3755 = vmatprep.subr.bf16.mxu1 (!%p359_p4), %v4161_v3  ;;  %v732_v25 = vld [vmem:[%s4908_s4] sm:$0xff] (!%p359_p4)  ;;  %v733_v26 = vld [vmem:[%s4908_s4 + $0x8] sm:$0xff] (!%p359_p4)  ;;  %v734_v33 = vld [vmem:[%s4908_s4 + $0x10] sm:$0xff] (!%p359_p4)  ;;  %vm1054_vm2 = vcmask (!%p359_p4), 64512  }
  0x2a   : > { %s4356_s27 = sshll.u32 (!%p359_p4), %s4923_s16, 3  ;;  %p412_p2 = scmp.lt.s32.totalorder (!%p359_p4), %s4147_s20, 1  ;;  %3533 = vmatprep.mubr.msk.f32.mxu0 (!%p359_p4), %vm4162_vm0, %v4163_v11  ;;  %3544 = vmatprep.mubr.msk.f32.mxu1 (!%p359_p4), %vm4162_vm0, %v4163_v11  ;;  %v736_v27 = vld [vmem:[%s4908_s4 + $0x20] sm:$0xff] (!%p359_p4)  ;;  %v737_v28 = vld [vmem:[%s4908_s4 + $0x28] sm:$0xff] (!%p359_p4)  ;;  %v3773_v31 = vpack.c.bf16 (!%p359_p4), %v733_v26, %v732_v25  ;;  %v735_v34 = vld [vmem:[%s4908_s4 + $0x18] sm:$0xff] (!%p359_p4)  ;;  %vm1375_vm4 = vcmask (!%p359_p4), 130048  }
  0x2b   : > { %p421_p5 = scmp.lt.s32.totalorder (!%p359_p4), %s4143_s19, 1  ;;  %s4953_s0 = sld [smem:[#allocation19_spill]] (!%p359_p4)  ;;  %v3781_v32 = vpack.c.bf16 (!%p359_p4), %v737_v28, %v736_v27  ;;  %v738_v35 = vld [vmem:[%s4908_s4 + $0x30] sm:$0xff] (!%p359_p4)  ;;  %v739_v36 = vld [vmem:[%s4908_s4 + $0x38] sm:$0xff] (!%p359_p4)  ;;  %v3777_v37 = vpack.c.bf16 (!%p359_p4), %v735_v34, %v734_v33  ;;  %v740_v39 = vld [vmem:[%s4908_s4 + $0x40] sm:$0xff] (!%p359_p4) }
  0x2c   : > { %s4954_s2 = sld [smem:[#allocation21_spill]] (!%p359_p4)  ;;  %v3785_v38 = vpack.c.bf16 (!%p359_p4), %v739_v36, %v738_v35  ;;  %v741_v40 = vld [vmem:[%s4908_s4 + $0x48] sm:$0xff] (!%p359_p4)  ;;  %v744_v42 = vld [vmem:[%s4908_s4 + $0x60] sm:$0xff] (!%p359_p4)  ;;  %v742_v46 = vld [vmem:[%s4908_s4 + $0x50] sm:$0xff] (!%p359_p4)  ;;  %s4957_s1 = sld [smem:[#allocation20_spill]] (!%p359_p4) }
  0x2d   : > { %v745_v43 = vld [vmem:[%s4908_s4 + $0x68] sm:$0xff] (!%p359_p4)  ;;  %v3789_v44 = vpack.c.bf16 (!%p359_p4), %v741_v40, %v740_v39  ;;  %v743_v47 = vld [vmem:[%s4908_s4 + $0x58] sm:$0xff] (!%p359_p4)  ;;  %v746_v48 = vld [vmem:[%s4908_s4 + $0x70] sm:$0xff] (!%p359_p4)  ;;  %s4928_s11 = sand.u32 (!%p359_p4), 1, %s4123_s14   ;;  %p3404_p6 = scmp.ne.s32.totalorder (!%p359_p4), %s4143_s19, 0 }
  0x2e   : > { %v3797_v45 = vpack.c.bf16 (!%p359_p4), %v745_v43, %v744_v42  ;;  %v747_v49 = vld [vmem:[%s4908_s4 + $0x78] sm:$0xff] (!%p359_p4)  ;;  %v3793_v51 = vpack.c.bf16 (!%p359_p4), %v743_v47, %v742_v46  ;;  %vm4527_vm3 = vmpackc.low (!%p359_p4), %vm1054_vm2, %vm1054_vm2  ;;  %s3337_s9 = sshll.u32 (!%p359_p4), %s4928_s11, 4 }
  0x2f   : > { %v432_v0 = vld [vmem:[%s4952_s3] sm:$0xff] (!%p359_p4)  ;;  %v433_v1 = vld [vmem:[%s4952_s3 + $0x8] sm:$0xff] (!%p359_p4)  ;;  %v434_v6 = vld [vmem:[%s4952_s3 + $0x10] sm:$0xff] (!%p359_p4)  ;;  %v3801_v52 = vpack.c.bf16 (!%p359_p4), %v747_v49, %v746_v48 }
  0x30   : > { %v436_v2 = vld [vmem:[%s4952_s3 + $0x20] sm:$0xff]  ;;  %v3750_v4 = vpack.c.bf16 %v433_v1, %v432_v0  ;;  %v437_v5 = vld [vmem:[%s4952_s3 + $0x28] sm:$0xff]  ;;  %v435_v7 = vld [vmem:[%s4952_s3 + $0x18] sm:$0xff]  ;;  %s4381_s29 = scalar_select %p412_p2, %s4147_s20, 1 }
  0x31   : > { %v3756_v8 = vpack.c.bf16 %v437_v5, %v436_v2  ;;  %v438_v9 = vld [vmem:[%s4952_s3 + $0x30] sm:$0xff]  ;;  %v439_v10 = vld [vmem:[%s4952_s3 + $0x38] sm:$0xff]  ;;  %v3753_v12 = vpack.c.bf16 %v435_v7, %v434_v6  ;;  %v440_v14 = vld [vmem:[%s4952_s3 + $0x40] sm:$0xff]  ;;  %s422_s26 = scalar_select %p421_p5, %s4143_s19, 1 }
  0x32   : > { %3751 = vmatpush3.bf16.msra.mxu0 %v3750_v4  ;;  %v3759_v13 = vpack.c.bf16 %v439_v10, %v438_v9  ;;  %v441_v15 = vld [vmem:[%s4952_s3 + $0x48] sm:$0xff]  ;;  %s3338_s12 = sshll.u32 %s4381_s29, 3  ;;  %v444_v16 = vld [vmem:[%s4952_s3 + $0x60] sm:$0xff]  ;;  %s3340_s22 = sshll.u32 %s4381_s29, 2  ;;  %v442_v21 = vld [vmem:[%s4952_s3 + $0x50] sm:$0xff] }
  0x33   : > { %3757 = vmatpush3.bf16.msra.mxu1 %v3756_v8  ;;  %3752 = vmatprep.subr.bf16.mxu0 %v4161_v3  ;;  %v445_v17 = vld [vmem:[%s4952_s3 + $0x68] sm:$0xff]  ;;  %s415_s18 = scalar_lea.vmem %s4953_s0, %s3338_s12  ;;  %v3762_v19 = vpack.c.bf16 %v441_v15, %v440_v14  ;;  %v443_v22 = vld [vmem:[%s4952_s3 + $0x58] sm:$0xff]  ;;  %v446_v23 = vld [vmem:[%s4952_s3 + $0x70] sm:$0xff]  ;;  %s3339_s24 = sshll.u32 %s422_s26, 1 }
  0x34   : > { %3758 = vmatprep.subr.bf16.mxu1 %v4161_v3  ;;  %v4403_v18 = vld [vmem:[%s415_s18] sm:$0xff]  ;;  %v3768_v20 = vpack.c.bf16 %v445_v17, %v444_v16  ;;  %v447_v24 = vld [vmem:[%s4952_s3 + $0x78] sm:$0xff]  ;;  %s425_s12 = sadd.s32 %s3340_s22, %s3339_s24  ;;  %v3765_v29 = vpack.c.bf16 %v443_v22, %v442_v21  ;;  %s418_s18 = scalar_lea.vmem %s4957_s1, %s4381_s29 }
  0x35   : > { %v3771_v30 = vpack.c.bf16 %v447_v24, %v446_v23  ;;  %s3341_s0 = sshll.u32 %s425_s12, 3  ;;  %s411_s26 = scalar_lea.vmem [#allocation4], %s3337_s9 }
  0x36   : > { %3754 = vmatpush3.bf16.msra.mxu0 %v3753_v12  ;;  %s427_s21 = scalar_lea.vmem %s4954_s2, %s3341_s0  ;;  %s404_s22 = scalar_lea.vmem [#allocation2], %s4356_s27 }
  0x37   : > { %3760 = vmatpush3.bf16.msra.mxu1 %v3759_v13  ;;  %3761 = vmatprep.subr.bf16.mxu0 %v4161_v3  ;;  %v4465_v41 = vld [vmem:[%s427_s21] sm:$0xff]  ;;  %v4491_v50 = vld [vmem:[%s427_s21 + $0x8] sm:$0xff]  ;;  %s4164_s21 = smov 120  }
  0x38   : > { %3767 = vmatprep.subr.bf16.mxu1 %v4161_v3 }
  0x39   : > { %3534 = vmatmul.mubr.msk.f32.vlgmr.msra.gmra.mrb[0].mxu0 %vm448_vm1, %v4403_v18 }
  0x3a   : > { %3545 = vmatmul.mubr.msk.f32.vlgmr.msra.gmra.mrb[0].mxu1 %vm448_vm1, %v4403_v18  ;;  %3763 = vmatpush3.bf16.msra.mxu0 %v3762_v19 }
  0x3b   : > { %3769 = vmatpush3.bf16.msra.mxu1 %v3768_v20  ;;  %3764 = vmatprep.subr.bf16.mxu0 %v4161_v3 }
  0x3c   : > { %3770 = vmatprep.subr.bf16.mxu1 %v4161_v3  ;;  %3555 = vmatprep.mubr.msk.f32.mxu0 %vm4162_vm0, %v4163_v11 }
  0x3d   : > { %3566 = vmatprep.mubr.msk.f32.mxu1 %vm4162_vm0, %v4163_v11 }
  0x3e   : > { %3766 = vmatpush3.bf16.msra.mxu0 %v3765_v29 }
  0x3f   : > { %3772 = vmatpush3.bf16.msra.mxu1 %v3771_v30  ;;  %3774 = vmatprep.subr.bf16.mxu0 %v3773_v31 }
  0x40   : > { %3782 = vmatprep.subr.bf16.mxu1 %v3781_v32 }
  0x41   : > { %3556 = vmatmul.mubr.msk.f32.vlgmr.msra.gmra.mrb[2].mxu0 %vm448_vm1, %v4403_v18 }
  0x42   : > { %3567 = vmatmul.mubr.msk.f32.vlgmr.msra.gmra.mrb[2].mxu1 %vm448_vm1, %v4403_v18  ;;  %3776 = vmatpush3.bf16.msra.mxu0 %v3773_v31 }
  0x43   : > { %3784 = vmatpush3.bf16.msra.mxu1 %v3781_v32  ;;  %3778 = vmatprep.subr.bf16.mxu0 %v3777_v37 }
  0x44   : > { %3786 = vmatprep.subr.bf16.mxu1 %v3785_v38  ;;  %3577 = vmatprep.mubr.msk.f32.mxu0 %vm448_vm1, %v4465_v41 }
  0x45   : > { %3588 = vmatprep.mubr.msk.f32.mxu1 %vm448_vm1, %v4465_v41 }
  0x46   : > { %3780 = vmatpush3.bf16.msra.mxu0 %v3777_v37 }
  0x47   : > { %3788 = vmatpush3.bf16.msra.mxu1 %v3785_v38  ;;  %3790 = vmatprep.subr.bf16.mxu0 %v3789_v44 }
  0x48   : > { %3798 = vmatprep.subr.bf16.mxu1 %v3797_v45 }
  0x49   : > { %3578 = vmatmul.mubr.msk.f32.vlgmr.msra.gmra.mrb[4].mxu0 %vm448_vm1, %v4491_v50 }
  0x4a   : > { %3589 = vmatmul.mubr.msk.f32.vlgmr.msra.gmra.mrb[4].mxu1 %vm448_vm1, %v4491_v50  ;;  %3792 = vmatpush3.bf16.msra.mxu0 %v3789_v44 }
  0x4b   : > { %3800 = vmatpush3.bf16.msra.mxu1 %v3797_v45  ;;  %3794 = vmatprep.subr.bf16.mxu0 %v3793_v51 }
  0x4c   : > { %3802 = vmatprep.subr.bf16.mxu1 %v3801_v52  ;;  %3599 = vmatprep.mubr.msk.f32.mxu0 %vm448_vm1, %v4465_v41 }
  0x4d   : > { %3610 = vmatprep.mubr.msk.f32.mxu1 %vm448_vm1, %v4465_v41 }
  0x4e   : > { %3796 = vmatpush3.bf16.msra.mxu0 %v3793_v51 }
  0x4f   : > { %3804 = vmatpush3.bf16.msra.mxu1 %v3801_v52  ;;  %3805 = vmatprep.subr.bf16.mxu0 %v4161_v3 }
  0x50   : > { %3809 = vmatprep.subr.bf16.mxu1 %v4161_v3 }
  0x51   : > { %3600 = vmatmul.mubr.msk.f32.vlgmr.msra.gmra.mrb[6].mxu0 %vm448_vm1, %v4491_v50 }
  0x52   : > { %3611 = vmatmul.mubr.msk.f32.vlgmr.msra.gmra.mrb[6].mxu1 %vm448_vm1, %v4491_v50  ;;  %3617 = vmatprep.mubr.msk.f32.mxu0 %vm4162_vm0, %v4163_v11 }
  0x53   : > { %3624 = vmatprep.mubr.msk.f32.mxu1 %vm4162_vm0, %v4163_v11 }
 0x10c   : > { %v4511_v53 = vpop.f32.mrb[0].mxu0 }
 0x10d   : > { %v3535_v54 = vpop.f32.mrb[1].mxu0  ;;  %v4513_v55 = vpop.f32.mrb[0].mxu1 }
 0x10e   : > { %v3546_v56 = vpop.f32.mrb[1].mxu1 }
 0x114   : > { %v4515_v57 = vpop.f32.mrb[2].mxu0 }
 0x115   : > { %v3557_v58 = vpop.f32.mrb[3].mxu0  ;;  %v4517_v59 = vpop.f32.mrb[2].mxu1 }
 0x116   : > { %v3568_v60 = vpop.f32.mrb[3].mxu1 }
 0x11c   : > { %v4519_v61 = vpop.f32.mrb[4].mxu0 }
 0x11d   : > { %v4521_v62 = vpop.f32.mrb[4].mxu1  ;;  %v4523_v63 = vpop.f32.mrb[5].mxu0 }
 0x11e   : > { %v3941_v1 = vpack.i.bf16 %v4519_v61, %v4523_v63  ;;  %v3806_v2 = vpack.c.bf16 %v4519_v61, %v4523_v63  ;;  %v4535_v4 = vpop.f32.mrb[5].mxu1 }
 0x11f   : > { %v3946_v5 = vpack.i.bf16 %v4521_v62, %v4535_v4  ;;  %v3810_v6 = vpack.c.bf16 %v4521_v62, %v4535_v4 }
 0x120   : > { %3808 = vmatpush3.bf16.xpose.msk.msra.mxu0 %vm4527_vm3, %v3806_v2 }
 0x121   : > { %3812 = vmatpush3.bf16.xpose.msk.msra.mxu1 %vm4527_vm3, %v3810_v6  ;;  %3813 = vmatprep.subr.bf16.mxu0 %v4161_v3 }
 0x122   : > { %3817 = vmatprep.subr.bf16.mxu1 %v4161_v3 }
 0x124   : > { %v4547_v7 = vpop.f32.mrb[6].mxu0 }
 0x125   : > { %v4549_v8 = vpop.f32.mrb[6].mxu1  ;;  %v4551_v9 = vpop.f32.mrb[7].mxu0 }
 0x126   : > { %v3951_v10 = vpack.i.bf16 %v4547_v7, %v4551_v9  ;;  %v3814_v12 = vpack.c.bf16 %v4547_v7, %v4551_v9  ;;  %v4557_v13 = vpop.f32.mrb[7].mxu1 }
 0x127   : > { %v3956_v14 = vpack.i.bf16 %v4549_v8, %v4557_v13  ;;  %v3818_v15 = vpack.c.bf16 %v4549_v8, %v4557_v13  ;;  %3618 = vmatmul.mubr.msk.f32.vlgmr.msra.gmra.mrb[8].mxu0 %vm1054_vm2, %v4511_v53 }
 0x128   : > { %3625 = vmatmul.mubr.msk.f32.vlgmr.msra.gmra.mrb[8].mxu1 %vm1054_vm2, %v4513_v55  ;;  %3816 = vmatpush3.bf16.xpose.msk.msra.mxu0 %vm4527_vm3, %v3814_v12 }
 0x129   : > { %3820 = vmatpush3.bf16.xpose.msk.msra.mxu1 %vm4527_vm3, %v3818_v15  ;;  %3631 = vmatprep.mubr.msk.f32.mxu0 %vm4162_vm0, %v4163_v11 }
 0x12a   : > { %3638 = vmatprep.mubr.msk.f32.mxu1 %vm4162_vm0, %v4163_v11  ;;  %3824 = vmatprep.subr.bf16.mxu1 %v4161_v3 }
 0x12b   : > { %3821 = vmatprep.subr.bf16.mxu0 %v4161_v3 }
 0x12f   : > { %3632 = vmatmul.mubr.msk.f32.vlgmr.msra.gmra.mrb[10].mxu0 %vm1054_vm2, %v4515_v57 }
 0x130   : > { %3639 = vmatmul.mubr.msk.f32.vlgmr.msra.gmra.mrb[10].mxu1 %vm1054_vm2, %v4517_v59  ;;  %3645 = vmatprep.mubr.msk.f32.mxu0 %vm4162_vm0, %v4163_v11 }
 0x131   : > { %3652 = vmatprep.mubr.msk.f32.mxu1 %vm4162_vm0, %v4163_v11 }
 0x1fa   : > { %v1130_v16 = vpop.f32.mrb[8].mxu0 }
 0x1fb   : > { %v1371_v17 = vmul.f32 0.35355338, %v1130_v16  ;;  %v1209_v19 = vpop.f32.mrb[8].mxu1  ;;  %v3619_v20 = vpop.f32.mrb[9].mxu0 }
 0x1fc   : > { %v3626_v21 = vpop.f32.mrb[9].mxu1  ;;  %v1372_v22 = vmul.f32 0.35355338, %v1209_v19 }
 0x1fd   : > { %v1376_v23 = vsel %vm1375_vm4, %v1371_v17, -inf }
 0x1fe   : > { %1377 = vmax.xlane.f32.xlu0 %v1376_v23  ;;  %v1379_v24 = vsel %vm1375_vm4, %v1372_v22, -inf }
 0x202   : > { %1380 = vmax.xlane.f32.xlu0 %v1379_v24  ;;  %v1288_v25 = vpop.f32.mrb[10].mxu0 }
 0x203   : > { %v1367_v26 = vpop.f32.mrb[10].mxu1  ;;  %v1373_v27 = vmul.f32 0.35355338, %v1288_v25  ;;  %v3633_v28 = vpop.f32.mrb[11].mxu0 }
 0x204   : > { %v3640_v29 = vpop.f32.mrb[11].mxu1  ;;  %v1374_v30 = vmul.f32 0.35355338, %v1367_v26 }
 0x205   : > { %v1382_v31 = vsel %vm1375_vm4, %v1373_v27, -inf }
 0x206   : > { %1383 = vmax.xlane.f32.xlu1 %v1382_v31  ;;  %v1385_v32 = vsel %vm1375_vm4, %v1374_v30, -inf  ;;  %v429_v31 = vld [vmem:[%s418_s18] sm:$0x1] }
 0x207   : > { %vm2044_vm5 = vcmp.gt.f32.partialorder %v429_v31, 0.5 }
 0x20a   : > { %1386 = vmax.xlane.f32.xlu1 %v1385_v32 }
 0x28b   : > { %v1378_v33 = vpop.xlane.xlu0 %1377 }
 0x28c   : > { %v1388_v34 = vsub.f32 %v1371_v17, %v1378_v33 }
 0x28e   : > { %v1392_v35 = vmul.f32 1.442695, %v1388_v34 }
 0x28f   : > { %v1381_v36 = vpop.xlane.xlu0 %1380 }
 0x290   : > { %3961 = vpow2.f32 %v1392_v35  ;;  %v1389_v37 = vsub.f32 %v1372_v22, %v1381_v36  ;;  %v4165_v36 = vmov 0  }
 0x292   : > { %v1394_v38 = vmul.f32 1.442695, %v1389_v37 }
 0x293   : > { %v1384_v39 = vpop.xlane.xlu1 %1383 }
 0x294   : > { %3963 = vpow2.f32 %v1394_v38  ;;  %v1390_v40 = vsub.f32 %v1373_v27, %v1384_v39 }
 0x296   : > { %v1396_v42 = vmul.f32 1.442695, %v1390_v40 }
 0x297   : > { %v1387_v49 = vpop.xlane.xlu1 %1386 }
 0x298   : > { %3965 = vpow2.f32 %v1396_v42  ;;  %v1391_v51 = vsub.f32 %v1374_v30, %v1387_v49 }
 0x29a   : > { %v3962_v43 = vpop.eup %3961  ;;  %v1398_v52 = vmul.f32 1.442695, %v1391_v51 }
 0x29b   : > { %v1400_v44 = vsel %vm1375_vm4, %v3962_v43, 0.0 }
 0x29c   : > { %1401 = vadd.xlane.f32.xlu0 %v1400_v44  ;;  %3967 = vpow2.f32 %v1398_v52 }
 0x29e   : > { %v3964_v45 = vpop.eup %3963 }
 0x29f   : > { %v1403_v46 = vsel %vm1375_vm4, %v3964_v45, 0.0 }
 0x2a0   : > { %1404 = vadd.xlane.f32.xlu1 %v1403_v46 }
 0x2a2   : > { %v3966_v47 = vpop.eup %3965 }
 0x2a3   : > { %v1406_v48 = vsel %vm1375_vm4, %v3966_v47, 0.0 }
 0x2a4   : > { %1407 = vadd.xlane.f32.xlu0 %v1406_v48 }
 0x2a6   : > { %v3968_v54 = vpop.eup %3967 }
 0x2a7   : > { %v1409_v56 = vsel %vm1375_vm4, %v3968_v54, 0.0 }
 0x2b1   : > { %3947 = vrot.lane.b32.xlu1 %v3946_v5, %s4164_s21 }
 0x2b5   : > { %3952 = vrot.lane.b32.xlu1 %v3951_v10, %s4164_s21 }
 0x2ba   : > { %3942 = vrot.lane.b32.xlu0 %v3941_v1, %s4164_s21 }
 0x2d9   : > { %1410 = vadd.xlane.f32.xlu1 %v1409_v56 }
 0x2ea   : > { %3957 = vrot.lane.b32.xlu1 %v3956_v14, %s4164_s21 }
 0x329   : > { %v1402_v58 = vpop.xlane.xlu0 %1401 }
 0x32a   : > { %3969 = vrcp.f32 %v1402_v58 }
 0x32d   : > { %v1405_v60 = vpop.xlane.xlu1 %1404 }
 0x32e   : > { %3971 = vrcp.f32 %v1405_v60 }
 0x331   : > { %v1408_v0 = vpop.xlane.xlu0 %1407  ;;  %v3948_v2 = vpop.permute.xlu1 %3947 }
 0x332   : > { %3973 = vrcp.f32 %v1408_v0  ;;  %v3950_v1 = vunpack.i.h.bf16 %v3948_v2  ;;  %v3949_v5 = vunpack.i.l.bf16 %v3948_v2 }
 0x334   : > { %v3825_v6 = vpack.c.bf16 %v3950_v1, %v3949_v5  ;;  %v3970_v17 = vpop.eup %3969 }
 0x335   : > { %v3943_v10 = vpop.permute.xlu0 %3942  ;;  %v3953_v12 = vpop.permute.xlu1 %3952  ;;  %v1413_v23 = vmul.f32 %v3970_v17, %v3962_v43 }
 0x336   : > { %v3945_v15 = vunpack.i.h.bf16 %v3943_v10  ;;  %v3944_v16 = vunpack.i.l.bf16 %v3943_v10  ;;  %3826 = vmatpush3.bf16.msra.mxu1 %v3825_v6  ;;  %v3955_v20 = vunpack.i.h.bf16 %v3953_v12  ;;  %v3954_v21 = vunpack.i.l.bf16 %v3953_v12 }
 0x337   : > { %3830 = vmatprep.subr.bf16.mxu1 %v4161_v3 }
 0x338   : > { %v3972_v19 = vpop.eup %3971  ;;  %v3822_v14 = vpack.c.bf16 %v3945_v15, %v3944_v16  ;;  %v3828_v25 = vpack.c.bf16 %v3955_v20, %v3954_v21 }
 0x339   : > { %v1415_v22 = vmul.f32 %v3972_v19, %v3964_v45 }
 0x33a   : > { %3823 = vmatpush3.bf16.msra.mxu0 %v3822_v14 }
 0x33b   : > { %3653 = vmatmul.mubr.msk.f32.vlgmr.msra.gmra.mrb[12].mxu1 %vm1375_vm4, %v1415_v22  ;;  %3827 = vmatprep.subr.bf16.mxu0 %v4161_v3 }
 0x33c   : > { %v3974_v24 = vpop.eup %3973  ;;  %3666 = vmatprep.mubr.msk.f32.mxu1 %vm4162_vm0, %v4163_v11 }
 0x33d   : > { %3646 = vmatmul.mubr.msk.f32.vlgmr.msra.gmra.mrb[12].mxu0 %vm1375_vm4, %v1413_v23  ;;  %v1417_v26 = vmul.f32 %v3974_v24, %v3966_v47 }
 0x33e   : > { %3829 = vmatpush3.bf16.msra.mxu0 %v3828_v25  ;;  %3659 = vmatprep.mubr.msk.f32.mxu0 %vm4162_vm0, %v4163_v11 }
 0x33f   : > { %3669 = vmatprep.subr.msk.mxu0 %vm1054_vm2, %v4511_v53 }
 0x341   : > { %3660 = vmatmul.mubr.msk.f32.vlgmr.msra.gmra.mrb[14].mxu0 %vm1375_vm4, %v1417_v26 }
 0x342   : > { %3671 = vmatprep.mubr.msk.f32.mxu0 %vm1054_vm2, %v4523_v63 }
 0x347   : > { %3670 = vmatpush3.xpose.msk.msra.mxu0 %vm1054_vm2, %v4511_v53 }
 0x348   : > { %3679 = vmatprep.subr.msk.mxu0 %vm1054_vm2, %v4515_v57 }
 0x34a   : > { %3672 = vmatmul.mubr.msk.f32.vlgmr.msra.gmra.mrb[16].mxu0 %vm1054_vm2, %v4519_v61 }
 0x34b   : > { %3680 = vmatpush3.xpose.msk.msra.mxu0 %vm1054_vm2, %v4515_v57  ;;  %3681 = vmatprep.mubr.msk.f32.mxu0 %vm1054_vm2, %v4551_v9 }
 0x34e   : > { %3682 = vmatmul.mubr.msk.f32.vlgmr.msra.gmra.mrb[18].mxu0 %vm1054_vm2, %v4547_v7 }
 0x366   : > { %v1411_v3 = vpop.xlane.xlu1 %1410 }
 0x367   : > { %3975 = vrcp.f32 %v1411_v3 }
 0x36a   : > { %v3958_v63 = vpop.permute.xlu1 %3957 }
 0x36b   : > { %v3960_v27 = vunpack.i.h.bf16 %v3958_v63  ;;  %v3959_v28 = vunpack.i.l.bf16 %v3958_v63 }
 0x36d   : > { %v3831_v29 = vpack.c.bf16 %v3960_v27, %v3959_v28 }
 0x36f   : > { %3832 = vmatpush3.bf16.msra.mxu1 %v3831_v29 }
 0x370   : > { %3674 = vmatprep.subr.msk.mxu1 %vm1054_vm2, %v4513_v55 }
 0x371   : > { %v3976_v61 = vpop.eup %3975 }
 0x372   : > { %v1419_v30 = vmul.f32 %v3976_v61, %v3968_v54 }
 0x374   : > { %3667 = vmatmul.mubr.msk.f32.vlgmr.msra.gmra.mrb[14].mxu1 %vm1375_vm4, %v1419_v30 }
 0x375   : > { %3676 = vmatprep.mubr.msk.f32.mxu1 %vm1054_vm2, %v4535_v4  ;;  %v2046_v4 = vlaneseq }
 0x378   : > { %3675 = vmatpush3.xpose.msk.msra.mxu1 %vm1054_vm2, %v4513_v55 }
 0x379   : > { %3684 = vmatprep.subr.msk.mxu1 %vm1054_vm2, %v4517_v59 }
 0x37b   : > { %3677 = vmatmul.mubr.msk.f32.vlgmr.msra.gmra.mrb[16].mxu1 %vm1054_vm2, %v4521_v62  ;;  %v2047_v62 = vshrl.u32 %v2046_v4, 7 }
 0x37c   : > { %3685 = vmatpush3.xpose.msk.msra.mxu1 %vm1054_vm2, %v4517_v59  ;;  %3686 = vmatprep.mubr.msk.f32.mxu1 %vm1054_vm2, %v4557_v13 }
 0x37d   : > { %v2048_v13 = vsub.s32 0, %v2047_v62 }
 0x37f   : > { %3687 = vmatmul.mubr.msk.f32.vlgmr.msra.gmra.mrb[18].mxu1 %vm1054_vm2, %v4549_v8  ;;  %v2045_v8 = vsel %vm2044_vm5, 1, %v4165_v36 }
 0x380   : > { %v2049_v37 = vrot.slane %v2045_v8, %v2048_v13 }
 0x382   : > { %vm2050_vm6 = vcmp.eq.s32.totalorder %v2049_v37, 1 }
 0x40e   : > { %v4652_v7 = vpop.f32.mrb[12].mxu1 }
 0x40f   : > { %v3654_v9 = vpop.f32.mrb[13].mxu1 }
 0x410   : > { %v4654_v32 = vpop.f32.mrb[12].mxu0 }
 0x411   : > { %v3647_v33 = vpop.f32.mrb[13].mxu0 }
 0x414   : > { %v4656_v34 = vpop.f32.mrb[14].mxu0 }
 0x415   : > { %v3661_v35 = vpop.f32.mrb[15].mxu0 }
 0x41d   : > { %v3673_v38 = vpop.f32.mrb[16].mxu0 }
 0x41e   : > { %v2037_v39 = vmul.f32 0.35355338, %v3673_v38  ;;  %v1802_v40 = vpop.f32.mrb[17].mxu0 }
 0x41f   : > { %v2036_v42 = vmul.f32 0.35355338, %v1802_v40 }
 0x420   : > { %v2052_v43 = vsel %vm2050_vm6, -3.4028235e+38, %v2037_v39 }
 0x421   : > { %v3683_v44 = vpop.f32.mrb[18].mxu0  ;;  %v2062_v45 = vsel %vm1054_vm2, %v2052_v43, -inf  ;;  %v2051_v46 = vsel %vm2050_vm6, -3.4028235e+38, %v2036_v42 }
 0x422   : > { %v2041_v47 = vmul.f32 0.35355338, %v3683_v44  ;;  %2063 = vmax.xlane.f32.xlu1 %v2062_v45  ;;  %v1952_v48 = vpop.f32.mrb[19].mxu0  ;;  %v2059_v14 = vsel %vm1054_vm2, %v2051_v46, -inf }
 0x423   : > { %v2040_v49 = vmul.f32 0.35355338, %v1952_v48 }
 0x424   : > { %v2056_v51 = vsel %vm2050_vm6, -3.4028235e+38, %v2041_v47 }
 0x425   : > { %v2074_v52 = vsel %vm1054_vm2, %v2056_v51, -inf  ;;  %v2055_v54 = vsel %vm2050_vm6, -3.4028235e+38, %v2040_v49 }
 0x426   : > { %2075 = vmax.xlane.f32.xlu1 %v2074_v52  ;;  %v2071_v23 = vsel %vm1054_vm2, %v2055_v54, -inf }
 0x447   : > { %v4664_v56 = vpop.f32.mrb[14].mxu1 }
 0x448   : > { %v3668_v58 = vpop.f32.mrb[15].mxu1 }
 0x44e   : > { %v3678_v60 = vpop.f32.mrb[16].mxu1 }
 0x44f   : > { %v2039_v0 = vmul.f32 0.35355338, %v3678_v60  ;;  %v1877_v2 = vpop.f32.mrb[17].mxu1 }
 0x450   : > { %v2038_v1 = vmul.f32 0.35355338, %v1877_v2 }
 0x451   : > { %v2054_v5 = vsel %vm2050_vm6, -3.4028235e+38, %v2039_v0 }
 0x452   : > { %v3688_v6 = vpop.f32.mrb[18].mxu1  ;;  %v2068_v10 = vsel %vm1054_vm2, %v2054_v5, -inf  ;;  %v2053_v12 = vsel %vm2050_vm6, -3.4028235e+38, %v2038_v1 }
 0x453   : > { %v2043_v15 = vmul.f32 0.35355338, %v3688_v6  ;;  %2069 = vmax.xlane.f32.xlu0 %v2068_v10  ;;  %v2027_v16 = vpop.f32.mrb[19].mxu1  ;;  %v2065_v22 = vsel %vm1054_vm2, %v2053_v12, -inf }
 0x454   : > { %v2042_v17 = vmul.f32 0.35355338, %v2027_v16 }
 0x455   : > { %v2058_v19 = vsel %vm2050_vm6, -3.4028235e+38, %v2043_v15 }
 0x456   : > { %v2080_v20 = vsel %vm1054_vm2, %v2058_v19, -inf  ;;  %v2057_v21 = vsel %vm2050_vm6, -3.4028235e+38, %v2042_v17 }
 0x457   : > { %2060 = vmax.xlane.f32.xlu0 %v2059_v14  ;;  %2081 = vmax.xlane.f32.xlu1 %v2080_v20  ;;  %v2077_v24 = vsel %vm1054_vm2, %v2057_v21, -inf }
 0x45b   : > { %2066 = vmax.xlane.f32.xlu0 %v2065_v22 }
 0x45f   : > { %2072 = vmax.xlane.f32.xlu0 %v2071_v23 }
 0x463   : > { %2078 = vmax.xlane.f32.xlu0 %v2077_v24 }
 0x4af   : > { %v2064_v25 = vpop.xlane.xlu1 %2063 }
 0x4b0   : > { %v2084_v26 = vsub.f32 %v2052_v43, %v2064_v25 }
 0x4b2   : > { %v2093_v3 = vmul.f32 1.442695, %v2084_v26 }
 0x4b3   : > { %v2076_v28 = vpop.xlane.xlu1 %2075 }
 0x4b4   : > { %3977 = vpow2.f32 %v2093_v3  ;;  %v2088_v29 = vsub.f32 %v2056_v51, %v2076_v28 }
 0x4b6   : > { %v2101_v4 = vmul.f32 1.442695, %v2088_v29 }
 0x4be   : > { %v4676_v63 = vpop.eup %3977 }
 0x4bf   : > { %v2110_v27 = vsel %vm1054_vm2, %v4676_v63, 0.0 }
 0x4c0   : > { %2111 = vadd.xlane.f32.xlu1 %v2110_v27 }
 0x4e0   : > { %v2070_v61 = vpop.xlane.xlu0 %2069 }
 0x4e1   : > { %v2086_v30 = vsub.f32 %v2054_v5, %v2070_v61 }
 0x4e3   : > { %v2097_v9 = vmul.f32 1.442695, %v2086_v30 }
 0x4e4   : > { %v2061_v31 = vpop.xlane.xlu0 %2060  ;;  %v2082_v62 = vpop.xlane.xlu1 %2081 }
 0x4e5   : > { %3979 = vpow2.f32 %v2097_v9  ;;  %v2083_v33 = vsub.f32 %v2051_v46, %v2061_v31  ;;  %v2090_v13 = vsub.f32 %v2058_v19, %v2082_v62 }
 0x4e6   : > { %3981 = vpow2.f32 %v2101_v4 }
 0x4e7   : > { %v2091_v35 = vmul.f32 1.442695, %v2083_v33  ;;  %v2105_v36 = vmul.f32 1.442695, %v2090_v13  ;;  %v2484_v33 = vld [vmem:[%s4909_s5 + $0x8] sm:$0xff]  ;;  %v2485_v13 = vld [vmem:[%s4909_s5 + $0x10] sm:$0xff] }
 0x4e8   : > { %v2067_v8 = vpop.xlane.xlu0 %2066 }
 0x4e9   : > { %3983 = vpow2.f32 %v2091_v35  ;;  %v2085_v37 = vsub.f32 %v2053_v12, %v2067_v8  ;;  %v2486_v35 = vld [vmem:[%s4909_s5 + $0x18] sm:$0xff] }
 0x4ea   : > { %3985 = vpow2.f32 %v2105_v36  ;;  %v2795_v36 = vld [vmem:[%s4911_s7 + $0x8] sm:$0xff] }
 0x4eb   : > { %v2095_v38 = vmul.f32 1.442695, %v2085_v37 }
 0x4ec   : > { %v2073_v39 = vpop.xlane.xlu0 %2072 }
 0x4ed   : > { %3987 = vpow2.f32 %v2095_v38  ;;  %v2087_v40 = vsub.f32 %v2055_v54, %v2073_v39 }
 0x4ef   : > { %v4680_v42 = vpop.eup %3979  ;;  %v2099_v43 = vmul.f32 1.442695, %v2087_v40 }
 0x4f0   : > { %v2079_v44 = vpop.xlane.xlu0 %2078  ;;  %v2116_v45 = vsel %vm1054_vm2, %v4680_v42, 0.0  ;;  %v4684_v46 = vpop.eup %3981 }
 0x4f1   : > { %3989 = vpow2.f32 %v2099_v43  ;;  %v2089_v47 = vsub.f32 %v2057_v21, %v2079_v44  ;;  %2117 = vadd.xlane.f32.xlu1 %v2116_v45  ;;  %v2122_v51 = vsel %vm1054_vm2, %v4684_v46, 0.0 }
 0x4f3   : > { %v3984_v48 = vpop.eup %3983  ;;  %v2103_v49 = vmul.f32 1.442695, %v2089_v47 }
 0x4f4   : > { %v2107_v52 = vsel %vm1054_vm2, %v3984_v48, 0.0  ;;  %v4689_v54 = vpop.eup %3985 }
 0x4f5   : > { %3991 = vpow2.f32 %v2103_v49  ;;  %2123 = vadd.xlane.f32.xlu1 %v2122_v51  ;;  %2108 = vadd.xlane.f32.xlu0 %v2107_v52  ;;  %v2128_v60 = vsel %vm1054_vm2, %v4689_v54, 0.0 }
 0x4f7   : > { %v3988_v58 = vpop.eup %3987 }
 0x4f8   : > { %v2113_v0 = vsel %vm1054_vm2, %v3988_v58, 0.0 }
 0x4f9   : > { %2129 = vadd.xlane.f32.xlu1 %v2128_v60  ;;  %2114 = vadd.xlane.f32.xlu0 %v2113_v0 }
 0x4fb   : > { %v3990_v2 = vpop.eup %3989 }
 0x4fc   : > { %v2119_v1 = vsel %vm1054_vm2, %v3990_v2, 0.0 }
 0x4fd   : > { %2120 = vadd.xlane.f32.xlu0 %v2119_v1 }
 0x4ff   : > { %v3992_v5 = vpop.eup %3991 }
 0x500   : > { %v2125_v6 = vsel %vm1054_vm2, %v3992_v5, 0.0 }
 0x501   : > { %2126 = vadd.xlane.f32.xlu0 %v2125_v6 }
 0x50a   : > { %2231 = vrot.lane.b32.xlu1 %v4513_v55, %s4164_s21 }
 0x50e   : > { %2315 = vrot.lane.b32.xlu1 %v4515_v57, %s4164_s21 }
 0x512   : > { %2399 = vrot.lane.b32.xlu1 %v4517_v59, %s4164_s21 }
 0x517   : > { %2147 = vrot.lane.b32.xlu0 %v4511_v53, %s4164_s21 }
 0x54d   : > { %v2112_v10 = vpop.xlane.xlu1 %2111 }
 0x57e   : > { %v2118_v12 = vpop.xlane.xlu1 %2117 }
 0x582   : > { %v2124_v15 = vpop.xlane.xlu1 %2123  ;;  %v2109_v16 = vpop.xlane.xlu0 %2108 }
 0x583   : > { %3993 = vrcp.f32 %v2109_v16 }
 0x584   : > { %3995 = vrcp.f32 %v2112_v10 }
 0x585   : > { %3997 = vrcp.f32 %v2118_v12 }
 0x586   : > { %v2130_v17 = vpop.xlane.xlu1 %2129  ;;  %v2115_v19 = vpop.xlane.xlu0 %2114 }
 0x587   : > { %3999 = vrcp.f32 %v2115_v19 }
 0x588   : > { %4001 = vrcp.f32 %v2124_v15 }
 0x58a   : > { %v2232_v55 = vpop.permute.xlu1 %2231  ;;  %v2121_v14 = vpop.xlane.xlu0 %2120 }
 0x58b   : > { %4003 = vrcp.f32 %v2121_v14  ;;  %3694 = vmatprep.subr.mxu1 %v2232_v55 }
 0x58c   : > { %3695 = vmatpush3.msra.mxu1 %v2232_v55  ;;  %4005 = vrcp.f32 %v2130_v17 }
 0x58d   : > { %v3994_v57 = vpop.eup %3993 }
 0x58e   : > { %v2316_v59 = vpop.permute.xlu1 %2315  ;;  %v2127_v53 = vpop.xlane.xlu0 %2126  ;;  %v2132_v20 = vmul.f32 %v3994_v57, %v3984_v48 }
 0x58f   : > { %4007 = vrcp.f32 %v2127_v53  ;;  %v3996_v21 = vpop.eup %3995 }
 0x590   : > { %v3998_v22 = vpop.eup %3997  ;;  %3691 = vmatprep.mubr.msk.f32.mxu0 %vm1054_vm2, %v2132_v20  ;;  %v2134_v26 = vmul.f32 %v3996_v21, %v4676_v63  ;;  %v2483_v63 = vld [vmem:[%s4909_s5] sm:$0xff] }
 0x591   : > { %v4000_v23 = vpop.eup %3999  ;;  %v2138_v28 = vmul.f32 %v3998_v22, %v4680_v42 }
 0x592   : > { %v2400_v24 = vpop.permute.xlu1 %2399  ;;  %v2148_v25 = vpop.permute.xlu0 %2147  ;;  %v2136_v3 = vmul.f32 %v4000_v23, %v3988_v58 }
 0x593   : > { %3689 = vmatprep.subr.mxu0 %v2148_v25  ;;  %3704 = vmatprep.subr.mxu1 %v2400_v24  ;;  %v4002_v27 = vpop.eup %4001 }
 0x594   : > { %3690 = vmatpush3.msra.mxu0 %v2148_v25  ;;  %3696 = vmatprep.mubr.msk.f32.mxu1 %vm1054_vm2, %v2136_v3  ;;  %v2142_v30 = vmul.f32 %v4002_v27, %v4684_v46  ;;  %v3403_v3 = vld [vmem:[%s4912_s8] ss:$0 sm:$0xff] }
 0x595   : > { %v4004_v29 = vpop.eup %4003  ;;  %3692 = vmatmul.mubr.msk.f32.vlgmr.msra.gmra.mrb[20].mxu0 %vm1054_vm2, %v2134_v26  ;;  %3697 = vmatmul.mubr.msk.f32.vlgmr.msra.gmra.mrb[20].mxu1 %vm1054_vm2, %v2138_v28 }
 0x596   : > { %3699 = vmatprep.subr.mxu0 %v2316_v59  ;;  %v2140_v61 = vmul.f32 %v4004_v29, %v3990_v2  ;;  %3705 = vmatpush3.msra.mxu1 %v2400_v24  ;;  %v4006_v4 = vpop.eup %4005  ;;  %v3394_v2 = vld [vmem:[%s4910_s6] ss:$0 sm:$0xff] }
 0x597   : > { %3700 = vmatpush3.msra.mxu0 %v2316_v59  ;;  %3714 = vmatprep.subr.mxu1 %v4163_v11  ;;  %v2146_v62 = vmul.f32 %v4006_v4, %v4689_v54 }
 0x598   : > { %3701 = vmatprep.mubr.msk.f32.mxu0 %vm1054_vm2, %v2140_v61  ;;  %3709 = vmatprep.subr.mxu0 %v4163_v11 }
 0x599   : > { %v4008_v9 = vpop.eup %4007  ;;  %3702 = vmatmul.mubr.msk.f32.vlgmr.msra.gmra.mrb[22].mxu0 %vm1054_vm2, %v2142_v30 }
 0x59a   : > { %v2144_v31 = vmul.f32 %v4008_v9, %v3992_v5  ;;  %3710 = vmatpush3.msra.mxu0 %v2483_v63  ;;  %3711 = vmatprep.mubr.msk.f32.mxu0 %vm4162_vm0, %v4163_v11 }
 0x59b   : > { %3719 = vmatprep.subr.mxu0 %v4163_v11 }
 0x59c   : > { %3706 = vmatprep.mubr.msk.f32.mxu1 %vm1054_vm2, %v2144_v31  ;;  %v4166_v31 = vmov (!%p3404_p6), 0.0  }
 0x59d   : > { %3707 = vmatmul.mubr.msk.f32.vlgmr.msra.gmra.mrb[22].mxu1 %vm1054_vm2, %v2146_v62  ;;  %3712 = vmatmul.mubr.msk.f32.vlgmr.msra.gmra.mrb[24].mxu0 %vm1054_vm2, %v4654_v32  ;;  %v2794_v32 = vld [vmem:[%s4911_s7] sm:$0xff]  ;;  %3153 = vst.msk [vmem:[%s404_s22] sm:$0xff] (!%p3404_p6), %vm448_vm1, %v4166_v31 }
 0x59e   : > { %3715 = vmatpush3.msra.mxu1 %v2484_v33  ;;  %3716 = vmatprep.mubr.msk.f32.mxu1 %vm4162_vm0, %v4163_v11 }
 0x59f   : > { %3720 = vmatpush3.msra.mxu0 %v2485_v13  ;;  %3721 = vmatprep.mubr.msk.f32.mxu0 %vm4162_vm0, %v4163_v11 }
 0x5a0   : > { %3724 = vmatprep.subr.mxu1 %v4163_v11  ;;  %3729 = vmatprep.subr.mxu0 %v2794_v32 }
 0x5a1   : > { %3717 = vmatmul.mubr.msk.f32.vlgmr.msra.gmra.mrb[24].mxu1 %vm1054_vm2, %v4652_v7  ;;  %3722 = vmatmul.mubr.msk.f32.vlgmr.msra.gmra.mrb[26].mxu0 %vm1054_vm2, %v4656_v34  ;;  %v2796_v7 = vld [vmem:[%s4911_s7 + $0x10] sm:$0xff] }
 0x5a2   : > { %3725 = vmatpush3.msra.mxu1 %v2486_v35  ;;  %3726 = vmatprep.mubr.msk.f32.mxu1 %vm4162_vm0, %v4163_v11  ;;  %v2797_v11 = vld [vmem:[%s4911_s7 + $0x18] sm:$0xff] }
 0x5a3   : > { %3734 = vmatprep.subr.mxu1 %v2795_v36  ;;  %3730 = vmatpush3.msra.mxu0 %v2794_v32 }
 0x5a4   : > { %3739 = vmatprep.subr.mxu0 %v2796_v7 }
 0x5a5   : > { %3727 = vmatmul.mubr.msk.f32.vlgmr.msra.gmra.mrb[26].mxu1 %vm1054_vm2, %v4664_v56 }
 0x5a6   : > { %3735 = vmatpush3.msra.mxu1 %v2795_v36 }
 0x5a7   : > { %3744 = vmatprep.subr.mxu1 %v2797_v11 }
 0x668   : > { %v3693_v34 = vpop.f32.mrb[20].mxu0  ;;  %v3698_v56 = vpop.f32.mrb[20].mxu1 }
 0x669   : > { %v2222_v8 = vpop.f32.mrb[21].mxu0  ;;  %v2306_v37 = vpop.f32.mrb[21].mxu1 }
 0x66a   : > { %3731 = vmatprep.mubr.msk.f32.mxu0 %vm1054_vm2, %v2222_v8  ;;  %3736 = vmatprep.mubr.msk.f32.mxu1 %vm1054_vm2, %v2306_v37 }
 0x66b   : > { %3732 = vmatmul.mubr.msk.f32.vlgmr.msra.gmra.mrb[28].mxu0 %vm1054_vm2, %v3693_v34  ;;  %3737 = vmatmul.mubr.msk.f32.vlgmr.msra.gmra.mrb[28].mxu1 %vm1054_vm2, %v3698_v56 }
 0x66c   : > { %v3703_v38 = vpop.f32.mrb[22].mxu0  ;;  %3740 = vmatpush3.msra.mxu0 %v2796_v7  ;;  %3745 = vmatpush3.msra.mxu1 %v2797_v11 }
 0x66d   : > { %v2390_v39 = vpop.f32.mrb[23].mxu0 }
 0x66e   : > { %3741 = vmatprep.mubr.msk.f32.mxu0 %vm1054_vm2, %v2390_v39 }
 0x66f   : > { %3742 = vmatmul.mubr.msk.f32.vlgmr.msra.gmra.mrb[30].mxu0 %vm1054_vm2, %v3703_v38 }
 0x670   : > { %v3708_v40 = vpop.f32.mrb[22].mxu1  ;;  %v2556_v42 = vpop.f32.mrb[24].mxu0 }
 0x671   : > { %v2474_v43 = vpop.f32.mrb[23].mxu1  ;;  %v3713_v44 = vpop.f32.mrb[25].mxu0  ;;  %v2779_v47 = vsel %vm448_vm1, %v2556_v42, 0.0 }
 0x672   : > { %3746 = vmatprep.mubr.msk.f32.mxu1 %vm1054_vm2, %v2474_v43 }
 0x673   : > { %3747 = vmatmul.mubr.msk.f32.vlgmr.msra.gmra.mrb[30].mxu1 %vm1054_vm2, %v3708_v40 }
 0x674   : > { %v2629_v45 = vpop.f32.mrb[24].mxu1  ;;  %v2702_v46 = vpop.f32.mrb[26].mxu0 }
 0x675   : > { %v2780_v48 = vsel %vm448_vm1, %v2629_v45, 0.0  ;;  %v3718_v49 = vpop.f32.mrb[25].mxu1  ;;  %v3723_v51 = vpop.f32.mrb[27].mxu0  ;;  %v2782_v54 = vsel %vm448_vm1, %v2702_v46, 0.0 }
 0x676   : > { %v2781_v52 = vadd.f32 %v2780_v48, %v2779_v47 }
 0x678   : > { %v2783_v58 = vadd.f32 %v2782_v54, %v2781_v52  ;;  %v2775_v60 = vpop.f32.mrb[26].mxu1 }
 0x679   : > { %v2784_v0 = vsel %vm448_vm1, %v2775_v60, 0.0  ;;  %v3728_v1 = vpop.f32.mrb[27].mxu1 }
 0x67a   : > { %v2785_v5 = vadd.f32 %v2784_v0, %v2783_v58 }
 0x67c   : > { %v2793_v6 = vadd.f32 %v3394_v2, %v2785_v5 }
 0x73e   : > { %v3733_v10 = vpop.f32.mrb[28].mxu0  ;;  %v3738_v15 = vpop.f32.mrb[28].mxu1 }
 0x73f   : > { %v3129_v12 = vsel %vm448_vm1, %v3733_v10, 0.0  ;;  %v2870_v16 = vpop.f32.mrb[29].mxu0  ;;  %v3130_v17 = vsel %vm448_vm1, %v3738_v15, 0.0  ;;  %v2951_v55 = vpop.f32.mrb[29].mxu1 }
 0x740   : > { %v3122_v19 = vsel %vm448_vm1, %v2870_v16, 0.0  ;;  %v3131_v14 = vadd.f32 %v3130_v17, %v3129_v12  ;;  %v3123_v57 = vsel %vm448_vm1, %v2951_v55, 0.0 }
 0x741   : > { %v3124_v59 = vadd.f32 %v3123_v57, %v3122_v19 }
 0x742   : > { %v3743_v53 = vpop.f32.mrb[30].mxu0 }
 0x743   : > { %v3132_v20 = vsel %vm448_vm1, %v3743_v53, 0.0  ;;  %v3032_v21 = vpop.f32.mrb[31].mxu0 }
 0x744   : > { %v3133_v22 = vadd.f32 %v3132_v20, %v3131_v14  ;;  %v3125_v23 = vsel %vm448_vm1, %v3032_v21, 0.0 }
 0x745   : > { %v3126_v24 = vadd.f32 %v3125_v23, %v3124_v59 }
 0x746   : > { %v3748_v25 = vpop.f32.mrb[30].mxu1 }
 0x747   : > { %v3134_v26 = vsel %vm448_vm1, %v3748_v25, 0.0  ;;  %v3113_v27 = vpop.f32.mrb[31].mxu1 }
 0x748   : > { %v3135_v28 = vadd.f32 %v3134_v26, %v3133_v22  ;;  %v3127_v29 = vsel %vm448_vm1, %v3113_v27, 0.0 }
 0x749   : > { %v3128_v61 = vadd.f32 %v3127_v29, %v3126_v24  ;;  %3152 = sbr.rel (%p3404_p6) target bundleno = 1872 (0x750), region = 60 }
 0x74a   : > { %v3144_v30 = vadd.f32 %v3403_v3, %v3135_v28 }
 0x74b   : > { %v3143_v63 = vadd.f32 %v3403_v3, %v3128_v61 }
 0x74c   : > { %v3146_v4 = vmul.f32 %v3144_v30, %v4491_v50 }
 0x74d   : > { %v3145_v9 = vmul.f32 %v3143_v63, %v4465_v41 }
 0x74e   : > { %3148 = vst.msk [vmem:[%s411_s26 + $0x8] sm:$0xff] %vm448_vm1, %v3146_v4 }
 0x74f   : > { %3147 = vst.msk [vmem:[%s411_s26] sm:$0xff] %vm448_vm1, %v3145_v9 }
 0x750 PF: > { %v3155_v50 = vmul.f32 %v2793_v6, %v4403_v18  ;;  %s3407_s21 = sshll.u32 %s4147_s20, 7  ;;  %v3154_v41 = vld [vmem:[%s404_s22] sm:$0xff]  ;;  %s4958_s18 = sld [smem:[#allocation23_spill]] }
 0x751   : > { %s3178_s28 = sshll.u32 %s404_s22, 4  ;;  %s3408_s24 = sshll.u32 %s4143_s19, 1  ;;  %s4803_s28 = int_to_ptr.vmem [resolvable:$true] %s3178_s28 }
 0x752   : > { %v3156_v62 = vmul.f32 0.5, %v3155_v50  ;;  %s3409_s15 = sshll.u32 %s4147_s20, 2  ;;  %s3193_s9 = sshll.u32 %s411_s26, 4  ;;  %s4807_s9 = int_to_ptr.vmem [resolvable:$true] %s3193_s9 }
 0x753   : > { %s3190_s12 = sadd.s32 %s3409_s15, %s3408_s24  ;;  %s4961_s0 = sld [smem:[#allocation24_spill]] }
 0x754   : > { %v3157_v33 = vadd.f32 %v3156_v62, %v3154_v41  ;;  %s3410_s11 = sshll.u32 %s3190_s12, 7  ;;  %s4962_s1 = sand.u32 1, %s4135_s17  }
 0x755   : > { %s3160_s2 = scalar_lea.sflag [#allocation3], %s4962_s1  ;;  %s4009_s3 = scalar_lea.vmem %s4803_s28, 128 }
 0x756   : > { %s4959_s29 = smov %s4958_s18  ;;  %s4801_s16 = scalar_lea.hbm %s4958_s18, %s3407_s21  ;;  %3158 = vst.msk [vmem:[%s404_s22] sm:$0xff] %vm448_vm1, %v3157_v33 }
 0x757   : > { %p4010_p8 = scmp.ne.s32.totalorder %s4803_s28, %s4009_s3  ;;  %s4167_s19 = smov [#allocation2]  }
 0x758   : > { %s4013_s20 = sshll.u32 %s4167_s19, 4  ;;  %s4014_s20 = int_to_ptr.vmem [resolvable:$false] %s4013_s20 }
 0x759   : > { %s4813_s18 = scalar_lea.hbm %s4961_s0, %s3410_s11  ;;  %p4011_p9 = pnand %p4010_p8, %p4297_p3 }
 0x75a   : > { %s4015_s26 = scalar_lea.vmem %s4014_s20, 256  ;;  %p4016_p11 = scmp.lt.s32.totalorder %s4803_s28, %s4014_s20 }
 0x75b   : > { %p4012_p10 = pneg %p4011_p9  ;;  %p4017_p0 = scmp.lt.s32.totalorder %s4015_s26, %s4009_s3 }
 0x75d   : > { %p4018_p1 = por %p4017_p0, %p4016_p11 }
 0x75f   : > { %p4019_p4 = pnand %p4018_p1, %p4012_p10 }
 0x761   : > { %4022 = shalt.err (!%p4019_p4)
}
 0x762   : > { %s4023_s1 = scalar_lea.hbm %s4801_s16, 128  ;;  %s4027_s24 = scalar_lea.hbm %s4959_s29, 256 }
 0x763   : > { %p4024_p2 = scmp.ne.s32.totalorder %s4801_s16, %s4023_s1  ;;  %p4028_p8 = scmp.lt.u32.totalorder %s4801_s16, %s4959_s29 }
 0x764   : > { %p4029_p9 = scmp.lt.u32.totalorder %s4027_s24, %s4023_s1  ;;  %p4031_p11 = scmp.lt.u32.totalorder %s4023_s1, %s4801_s16 }
 0x765   : > { %p4025_p5 = pnand %p4024_p2, %p4297_p3 }
 0x766   : > { %p4030_p10 = por %p4029_p9, %p4028_p8 }
 0x767   : > { %p4026_p6 = pneg %p4025_p5 }
 0x768   : > { %p4032_p0 = por %p4031_p11, %p4030_p10 }
 0x76a   : > { %p4033_p1 = pnand %p4032_p0, %p4026_p6 }
 0x76c   : > { %4036 = shalt.err (!%p4033_p1)
}
 0x76d   : > { %3833 = dma.vmem_to_hbm [thread:$0]  (%p4297_p3), %s4803_s28, 128, %s4801_s16, %s3160_s2  }
 0x76e   : > { %s4963_s3 = sand.u32 1, %s4123_s14   ;;  %s4037_s25 = scalar_lea.vmem %s4807_s9, 256 }
 0x76f   : > { %s4840_s21 = scalar_lea.sflag [#allocation5], %s4963_s3  ;;  %p4038_p4 = scmp.ne.s32.totalorder %s4807_s9, %s4037_s25 }
 0x770   : > { %s4168_s19 = smov [#allocation4]  }
 0x771   : > { %p4039_p2 = pnand %p4038_p4, %p4326_p12  ;;  %s4041_s20 = sshll.u32 %s4168_s19, 4  ;;  %s4042_s20 = int_to_ptr.vmem [resolvable:$false] %s4041_s20 }
 0x772   : > { %s4043_s27 = scalar_lea.vmem %s4042_s20, 512  ;;  %p4044_p6 = scmp.lt.s32.totalorder %s4807_s9, %s4042_s20 }
 0x773   : > { %p4040_p5 = pneg %p4039_p2  ;;  %p4045_p8 = scmp.lt.s32.totalorder %s4043_s27, %s4037_s25 }
 0x775   : > { %p4046_p9 = por %p4045_p8, %p4044_p6 }
 0x777   : > { %p4047_p10 = pnand %p4046_p9, %p4040_p5 }
 0x779   : > { %4050 = shalt.err (!%p4047_p10)
}
 0x77a   : > { %s4051_s2 = scalar_lea.hbm %s4813_s18, 256  ;;  %s4055_s26 = scalar_lea.hbm %s4961_s0, 1024 }
 0x77b   : > { %p4052_p3 = scmp.ne.s32.totalorder %s4813_s18, %s4051_s2  ;;  %p4056_p1 = scmp.lt.u32.totalorder %s4813_s18, %s4961_s0 }
 0x77c   : > { %p4057_p4 = scmp.lt.u32.totalorder %s4055_s26, %s4051_s2  ;;  %p4059_p5 = scmp.lt.u32.totalorder %s4051_s2, %s4813_s18 }
 0x77d   : > { %p4053_p11 = pnand %p4052_p3, %p4326_p12 }
 0x77e   : > { %p4058_p2 = por %p4057_p4, %p4056_p1 }
 0x77f   : > { %p4054_p0 = pneg %p4053_p11 }
 0x780   : > { %p4060_p6 = por %p4059_p5, %p4058_p2 }
 0x782   : > { %p4061_p8 = pnand %p4060_p6, %p4054_p0 }
 0x784   : > { %4064 = shalt.err (!%p4061_p8)
}
 0x785   : > { %s4169_s22 = smov 128   ;;  %s4170_s24 = smov 8  }
 0x786   : > { %3834 = dma.vmem_to_hbm [thread:$0]  (%p4326_p12), %s4807_s9, 256, %s4813_s18, %s4840_s21, %s4169_s22, %s4169_s22, %s4170_s24  }
 0x787 PF: > { %s4964_s15 = sld [smem:[#allocation9_spill]]  ;;  %p3844_p9 = scmp.ge.s32.totalorder %s4159_s23, 2 }
 0x789   : > { %p3838_p10 = pnand %p3844_p9, %p4314_p7 }
 0x78d   : > { %s3208_s12 = sand.u32 1, %s4964_s15  }
 0x78e   : > { %s3209_s3 = scalar_lea.sflag [#allocation3], %s3208_s12 }
 0x78f   : > { %4110 = dma.done.wait (!%p3838_p10), %s3209_s3, 128  }
 0x790   : > { %4112 = vsyncadd (!%p3838_p10), %s3209_s3, 4294967168  ;;  %s3217_s19 = sand.u32 1, %s4119_s13   ;;  %p3841_p3 = pnand %p3844_p9, %p4338_p13 }
 0x791   : > { %s3218_s20 = scalar_lea.sflag [#allocation5], %s3217_s19 }
 0x792   : > { %4114 = dma.done.wait (!%p3841_p3), %s3218_s20, 256  }
 0x793   : > { %4116 = vsyncadd (!%p3841_p3), %s3218_s20, 4294967040  ;;  %s27_s23 = sadd.s32 1, %s4159_s23   ;;  %s4966_s30 = sld [smem:[#allocation8_spill]] }
 0x794   : > { %p24_p12 = scmp.ge.s32.totalorder %s27_s23, 6   ;;  %s4967_s15 = sld [smem:[#allocation17_spill]] }
 0x795   : > { %s4968_s10 = sld [smem:[#allocation10_spill]]  ;;  %s4969_s18 = sld [smem:[#allocation16_spill]] }
 0x796   : > { %s4970_s19 = sld [smem:[#allocation11_spill]]  ;;  %s4971_s20 = sld [smem:[#allocation12_spill]] }
 0x797   : > { %s4972_s21 = sld [smem:[#allocation13_spill]]  ;;  %s4973_s22 = sld [smem:[#allocation15_spill]] }
 0x798   : > { %s4974_s13 = smov %s4123_s14  ;;  %s4976_s16 = smov %s4135_s17 }
 0x799   : > { %s4975_s14 = smov %s4966_s30  ;;  %26 = sbr.rel (!%p24_p12) target bundleno = 16 (0x10), region = 118 }
 0x79b   : > { %s4977_s17 = smov %s4968_s10 }
 0x7a0   :  { %3223 = vsyncpa [#allocation3], 1 }
 0x7a1   :  { %3225 = vsyncpa [#allocation3 + $0x1], 1 }
 0x7a2   :  { %3226 = vsyncpa [#allocation5], 1 }
 0x7a3   :  { %3228 = vsyncpa [#allocation5 + $0x1], 1 }

</bundles_post_ra>
